<compile_context>
chip_gen: v6e
topology: v6e:2x2x1
jax: 0.10.0
libtpu: 0.0.40
codegen_flags: <defaults>
</compile_context>

<pallas_src>
import functools

import jax
import jax.numpy as jnp
import numpy as np
from jax.experimental import pallas as pl
from jax.experimental.pallas import tpu as pltpu

_NEG_BIG = -1e30  # finite "-inf" for masking (avoids inf/NaN in the online softmax)


def _elu(v):
    # F.elu with alpha=1.0 (min() keeps the unselected exp branch finite)
    return jnp.where(v > 0, v, jnp.exp(jnp.minimum(v, 0.0)) - 1.0)


def _pick_col_tile(n, max_tile=512):
    """Neighbor-axis tile.  Whole axis if small / not 128-aligned, else the largest
    128-multiple divisor of n that is <= max_tile.
    On v7x (64 MiB VMEM vs 128 MiB on v5e/v6e) pass max_tile=256."""
    if n <= max_tile or n % 128 != 0:
        return n
    t = (max_tile // 128) * 128
    while t >= 128:
        if n % t == 0:
            return t
        t -= 128
    return n


# -----------------------------------------------------------------------------
# Fused SpGraphAttentionLayer kernel: all heads + neighbor tiling in one call.
#   grid = (H, K)   H = heads ("parallel"), K = neighbor tiles ("arbitrary")
# -----------------------------------------------------------------------------
def fused_gat_layer_kernel(x_ref, w_ref, a_src_ref, a_dst_ref, adj_ref,   # inputs
                           out_ref,                                       # output
                           h_sc, fsrc_sc, fdst_sc, m_sc, l_sc, acc_sc,    # scratch
                           *, alpha, concat, log_softmax, col_tile, mxu_dtype):
    c = pl.program_id(1)

    # ---- per-head init (first neighbor tile): h = x @ W[head], f_src/f_dst, reset acc
    @pl.when(c == 0)
    def _init():
        h = jnp.dot(x_ref[...].astype(mxu_dtype), w_ref[...].astype(mxu_dtype),
                    preferred_element_type=jnp.float32)                    # (N, D) f32
        h_sc[...] = h
        # a·h via VPU multiply + lane reduction (no 1-column MXU matvec).
        fsrc_sc[...] = jnp.sum(h * a_src_ref[...], axis=-1, keepdims=True)      # (N, 1)
        fdst_sc[...] = jnp.sum(h * a_dst_ref[...], axis=-1, keepdims=True).T    # (1, N)
        m_sc[...] = jnp.full_like(m_sc, _NEG_BIG)
        l_sc[...] = jnp.zeros_like(l_sc)
        acc_sc[...] = jnp.zeros_like(acc_sc)

    # ---- this neighbor tile: columns [c*col_tile, (c+1)*col_tile)
    if col_tile == h_sc.shape[0]:          # single tile: whole graph, no dynamic slice
        h_cols = h_sc[...]                                                 # (Tc, D)
        f_dst = fdst_sc[...]                                               # (1, Tc)
    else:                                  # col_tile is a multiple of 128 -> aligned
        col0 = pl.multiple_of(c * col_tile, col_tile)
        h_cols = h_sc[pl.ds(col0, col_tile), :]
        f_dst = fdst_sc[:, pl.ds(col0, col_tile)]

    logits = fsrc_sc[...] + f_dst                                          # (N, Tc)
    s = -jnp.where(logits > 0, logits, alpha * logits)                     # -leaky_relu
    edge = adj_ref[...] != 0                                               # int8 mask
    s = jnp.where(edge, s, _NEG_BIG)       # row max taken over real edges only

    # flash-style online renormalisation across neighbor tiles (overflow-safe exp)
    m_new = jnp.maximum(m_sc[...], jnp.max(s, axis=-1, keepdims=True))     # (N, 1)
    p = jnp.where(edge, jnp.exp(s - m_new), 0.0)                           # (N, Tc) in [0,1]
    scale = jnp.exp(m_sc[...] - m_new)
    l_sc[...] = scale * l_sc[...] + jnp.sum(p, axis=-1, keepdims=True)
    acc_sc[...] = scale * acc_sc[...] + jnp.dot(
        p.astype(mxu_dtype), h_cols.astype(mxu_dtype),
        preferred_element_type=jnp.float32)
    m_sc[...] = m_new

    # ---- finalize on the last neighbor tile
    @pl.when(c == pl.num_programs(1) - 1)
    def _finalize():
        # With row-max stabilisation l >= 1 for any row that has an edge (self-loops
        # guarantee it); the max() guard turns an edgeless row into 0 instead of NaN.
        inv_l = pl.reciprocal(jnp.maximum(l_sc[...], 1e-30), approx=True)  # EUP slot
        hp = acc_sc[...] * inv_l                                           # (N, D)
        if concat:
            hp = _elu(hp)
        if log_softmax:                    # fused tail of the output layer
            v = _elu(hp)
            mx = jnp.max(v, axis=-1, keepdims=True)
            sh = v - mx
            hp = sh - jnp.log(jnp.sum(jnp.exp(sh), axis=-1, keepdims=True))
        out_ref[...] = hp.astype(out_ref.dtype)


def fused_gat_layer(x, adj_i8, W_all, a_src_all, a_dst_all, *, alpha, concat,
                    log_softmax, col_tile=None, mxu_dtype=jnp.bfloat16):
    N, F = x.shape
    H, F_w, D = W_all.shape
    assert F_w == F and adj_i8.shape == (N, N)
    assert a_src_all.shape == (H, 1, D) and a_dst_all.shape == (H, 1, D)

    if col_tile is None:
        col_tile = _pick_col_tile(N)
    assert N % col_tile == 0
    K = N // col_tile

    kernel = functools.partial(
        fused_gat_layer_kernel, alpha=alpha, concat=concat,
        log_softmax=log_softmax, col_tile=col_tile, mxu_dtype=mxu_dtype)

    return pl.pallas_call(
        kernel,
        out_shape=jax.ShapeDtypeStruct((H, N, D), jnp.float32),
        grid=(H, K),
        in_specs=[
            pl.BlockSpec((N, F), lambda h, c: (0, 0)),            # x: VMEM-resident
            pl.BlockSpec((None, F, D), lambda h, c: (h, 0, 0)),   # W[head]
            pl.BlockSpec((None, 1, D), lambda h, c: (h, 0, 0)),   # a_src[head]
            pl.BlockSpec((None, 1, D), lambda h, c: (h, 0, 0)),   # a_dst[head]
            pl.BlockSpec((N, col_tile), lambda h, c: (0, c)),     # adj tile (int8)
        ],
        out_specs=pl.BlockSpec((None, N, D), lambda h, c: (h, 0, 0)),
        scratch_shapes=[
            pltpu.VMEM((N, D), jnp.float32),   # h = x @ W[head]
            pltpu.VMEM((N, 1), jnp.float32),   # f_src
            pltpu.VMEM((1, N), jnp.float32),   # f_dst (row layout)
            pltpu.VMEM((N, 1), jnp.float32),   # running row max
            pltpu.VMEM((N, 1), jnp.float32),   # running row sum (denominator)
            pltpu.VMEM((N, D), jnp.float32),   # running numerator
        ],
        compiler_params=pltpu.CompilerParams(
            dimension_semantics=("parallel", "arbitrary"),   # heads // on v7x megacore
            vmem_limit_bytes=32 * 1024 * 1024,
        ),
    )(x, W_all, a_src_all, a_dst_all, adj_i8)


# -----------------------------------------------------------------------------
# SpGAT forward: two fused pallas_calls (heads layer; out layer + elu + log_softmax)
# -----------------------------------------------------------------------------
def spgat_forward(x, adj, params, *, alpha, mxu_dtype=jnp.bfloat16):
    # Eval mode: F.dropout(..., training=False) is the identity -> omitted.
    # (Training-mode dropout would use pltpu.prng_seed / stateful_bernoulli in-kernel.)
    adj_i8 = (adj != 0).astype(jnp.int8)          # 4x smaller adj DMA than f32

    heads = fused_gat_layer(                       # (H, N, nhid), single launch
        x, adj_i8, params["W_heads"], params["a_src_heads"], params["a_dst_heads"],
        alpha=alpha, concat=True, log_softmax=False, mxu_dtype=mxu_dtype)
    H, N, D = heads.shape
    x2 = jnp.transpose(heads, (1, 0, 2)).reshape(N, H * D)   # torch.cat(dim=1)

    out = fused_gat_layer(                         # (1, N, nclass): attn + elu + log_softmax
        x2, adj_i8, params["W_out"], params["a_src_out"], params["a_dst_out"],
        alpha=alpha, concat=False, log_softmax=True, mxu_dtype=mxu_dtype)
    return out[0]


# -----------------------------------------------------------------------------
# Pure-JAX f32 reference (mirrors the torch sparse implementation, eval mode)
# -----------------------------------------------------------------------------
def _ref_layer(x, adj, W, a_src, a_dst, alpha, concat):
    h = x @ W
    f1 = h @ a_src.T
    f2 = h @ a_dst.T
    logits = f1 + f2.T
    e = jnp.exp(-jnp.where(logits > 0, logits, alpha * logits))
    e = jnp.where(adj != 0, e, 0.0)
    hp = (e @ h) / e.sum(axis=1, keepdims=True)
    return jax.nn.elu(hp) if concat else hp


def _ref_forward(x, adj, params, alpha):
    H = params["W_heads"].shape[0]
    heads = [_ref_layer(x, adj, params["W_heads"][i], params["a_src_heads"][i],
                        params["a_dst_heads"][i], alpha, True) for i in range(H)]
    h = jnp.concatenate(heads, axis=1)
    out = jax.nn.elu(_ref_layer(h, adj, params["W_out"][0], params["a_src_out"][0],
                                params["a_dst_out"][0], alpha, False))
    return jax.nn.log_softmax(out, axis=1)


# -----------------------------------------------------------------------------
# Deterministic parameters (xavier_normal_, gain=1.414, as in SpGraphAttentionLayer),
# pre-stacked / pre-split once (a-vector slicing hoisted out of the hot path).
# -----------------------------------------------------------------------------
def _xavier_normal(key, shape, gain=1.414):
    std = gain * np.sqrt(2.0 / (shape[0] + shape[1]))
    return (std * jax.random.normal(key, shape, dtype=jnp.float32)).astype(jnp.float32)


def make_params(key, nfeat, nhid, nclass, nheads):
    keys = jax.random.split(key, 2 * nheads + 2)
    Ws, a_srcs, a_dsts = [], [], []
    for i in range(nheads):
        W = _xavier_normal(keys[2 * i], (nfeat, nhid))
        a = _xavier_normal(keys[2 * i + 1], (1, 2 * nhid))
        Ws.append(W)
        a_srcs.append(a[:, :nhid])
        a_dsts.append(a[:, nhid:])
    W_o = _xavier_normal(keys[-2], (nhid * nheads, nclass))
    a_o = _xavier_normal(keys[-1], (1, 2 * nclass))
    return {
        "W_heads": jnp.stack(Ws),              # (H, nfeat, nhid)
        "a_src_heads": jnp.stack(a_srcs),      # (H, 1, nhid)
        "a_dst_heads": jnp.stack(a_dsts),      # (H, 1, nhid)
        "W_out": W_o[None],                    # (1, nhid*H, nclass)
        "a_src_out": a_o[None, :, :nclass],    # (1, 1, nclass)
        "a_dst_out": a_o[None, :, nclass:],    # (1, 1, nclass)
    }


if __name__ == "__main__":
    # Small shapes consistent with SpGAT(nfeat, nhid, nclass, dropout, alpha, nheads)
    N, nfeat, nhid, nclass, nheads = 64, 32, 16, 8, 4
    alpha = 0.2            # LeakyReLU slope
    dropout = 0.6          # unused: eval mode (dropout == identity)

    key = jax.random.PRNGKey(0)
    k_x, k_adj, k_par = jax.random.split(key, 3)

    x = jax.random.normal(k_x, (N, nfeat), dtype=jnp.float32)
    adj = jnp.where(jax.random.uniform(k_adj, (N, N)) < 0.15, 1.0, 0.0)
    adj = jnp.maximum(adj, jnp.eye(N, dtype=jnp.float32))    # self-loops -> rowsum >= 1

    params = make_params(k_par, nfeat, nhid, nclass, nheads)
    ref = jax.block_until_ready(_ref_forward(x, adj, params, alpha))

    # f32 MXU path: bit-faithful math (approx reciprocal + stabilised exp only)
    out_f32 = jax.block_until_ready(
        spgat_forward(x, adj, params, alpha=alpha, mxu_dtype=jnp.float32))
    np.testing.assert_allclose(np.asarray(out_f32), np.asarray(ref), rtol=2e-2, atol=2e-2)

    # bf16 MXU inputs (f32 accumulation): the v6e/v7x throughput configuration
    out = jax.block_until_ready(
        spgat_forward(x, adj, params, alpha=alpha, mxu_dtype=jnp.bfloat16))
    np.testing.assert_allclose(np.asarray(out), np.asarray(ref), rtol=5e-2, atol=5e-2)

    assert out.shape == (N, nclass) and bool(jnp.all(jnp.isfinite(out)))
    print("KERNEL_OK")
</pallas_src>

<mosaic_0001>
module attributes {stable_mosaic.version = 11 : i64} {
  func.func @fused_gat_layer_kernel(%arg0: i32, %arg1: i32, %arg2: memref<64x32xf32, #tpu.memory_space<vmem>>, %arg3: memref<1x32x16xf32, #tpu.memory_space<vmem>>, %arg4: memref<1x1x16xf32, #tpu.memory_space<vmem>>, %arg5: memref<1x1x16xf32, #tpu.memory_space<vmem>>, %arg6: memref<64x64xi8, #tpu.memory_space<vmem>>, %arg7: memref<1x64x16xf32, #tpu.memory_space<vmem>>, %arg8: memref<64x16xf32, #tpu.memory_space<vmem>>, %arg9: memref<64x1xf32, #tpu.memory_space<vmem>>, %arg10: memref<1x64xf32, #tpu.memory_space<vmem>>, %arg11: memref<64x1xf32, #tpu.memory_space<vmem>>, %arg12: memref<64x1xf32, #tpu.memory_space<vmem>>, %arg13: memref<64x16xf32, #tpu.memory_space<vmem>>) attributes {dimension_semantics = [#tpu.dimension_semantics<parallel>, #tpu.dimension_semantics<arbitrary>], iteration_bounds = array<i64: 4, 1>, scalar_prefetch = 0 : i64, scratch_operands = 6 : i64, tpu.core_type = #tpu.core_type<tc>, window_params = [{pipeline_mode = #tpu.pipeline_mode<synchronous>, transform_indices = @transform_0, window_bounds = array<i64: 64, 32>}, {transform_indices = @transform_1, window_bounds = array<i64: 1, 32, 16>}, {transform_indices = @transform_2, window_bounds = array<i64: 1, 1, 16>}, {transform_indices = @transform_3, window_bounds = array<i64: 1, 1, 16>}, {transform_indices = @transform_4, window_bounds = array<i64: 64, 64>}, {transform_indices = @transform_5, window_bounds = array<i64: 1, 64, 16>}]} {
    %c0_i32 = arith.constant 0 : i32
    %0 = arith.cmpi eq, %arg1, %c0_i32 : i32
    %1 = arith.extui %0 : i1 to i32
    %c0_i32_0 = arith.constant 0 : i32
    %2 = arith.cmpi ne, %1, %c0_i32_0 : i32
    scf.if %2 {
      %c0_31 = arith.constant 0 : index
      %c0_32 = arith.constant 0 : index
      %49 = vector.load %arg2[%c0_31, %c0_32] : memref<64x32xf32, #tpu.memory_space<vmem>>, vector<64x32xf32>
      %c0_33 = arith.constant 0 : index
      %c0_34 = arith.constant 0 : index
      %c0_35 = arith.constant 0 : index
      %50 = vector.load %arg3[%c0_33, %c0_34, %c0_35] : memref<1x32x16xf32, #tpu.memory_space<vmem>>, vector<1x32x16xf32>
      %51 = vector.shape_cast %50 : vector<1x32x16xf32> to vector<32x16xf32>
      %cst_36 = arith.constant dense<0.000000e+00> : vector<64x16xf32>
      %52 = tpu.matmul %49, %51, %cst_36 {dimension_numbers = #tpu.dot_dimension_numbers<[1], [0], [0], [1], [0, 0, 1, 1], [], []>} : vector<64x32xf32>, vector<32x16xf32>, vector<64x16xf32> -> vector<64x16xf32>
      %c0_37 = arith.constant 0 : index
      %c0_38 = arith.constant 0 : index
      %53 = vector.load %arg8[%c0_37, %c0_38] : memref<64x16xf32, #tpu.memory_space<vmem>>, vector<64x16xf32>
      tpu.vector_store %arg8[%c0_37, %c0_38], %52 {strides = array<i32>} : memref<64x16xf32, #tpu.memory_space<vmem>>, vector<64x16xf32>,
      %c0_39 = arith.constant 0 : index
      %c0_40 = arith.constant 0 : index
      %c0_41 = arith.constant 0 : index
      %54 = vector.load %arg4[%c0_39, %c0_40, %c0_41] : memref<1x1x16xf32, #tpu.memory_space<vmem>>, vector<1x1x16xf32>
      %55 = vector.shape_cast %54 : vector<1x1x16xf32> to vector<1x16xf32>
      %56 = vector.broadcast %55 : vector<1x16xf32> to vector<64x16xf32>
      %57 = arith.mulf %52, %56 : vector<64x16xf32>
      %cst_42 = arith.constant dense<0.000000e+00> : vector<64xf32>
      %58 = vector.multi_reduction <add>, %57, %cst_42 [1] : vector<64x16xf32> to vector<64xf32>
      %59 = vector.shape_cast %58 : vector<64xf32> to vector<64x1xf32>
      %c0_43 = arith.constant 0 : index
      %c0_44 = arith.constant 0 : index
      %60 = vector.load %arg9[%c0_43, %c0_44] : memref<64x1xf32, #tpu.memory_space<vmem>>, vector<64x1xf32>
      tpu.vector_store %arg9[%c0_43, %c0_44], %59 {strides = array<i32>} : memref<64x1xf32, #tpu.memory_space<vmem>>, vector<64x1xf32>,
      %c0_45 = arith.constant 0 : index
      %c0_46 = arith.constant 0 : index
      %c0_47 = arith.constant 0 : index
      %61 = vector.load %arg5[%c0_45, %c0_46, %c0_47] : memref<1x1x16xf32, #tpu.memory_space<vmem>>, vector<1x1x16xf32>
      %62 = vector.shape_cast %61 : vector<1x1x16xf32> to vector<1x16xf32>
      %63 = vector.broadcast %62 : vector<1x16xf32> to vector<64x16xf32>
      %64 = arith.mulf %52, %63 : vector<64x16xf32>
      %cst_48 = arith.constant dense<0.000000e+00> : vector<64xf32>
      %65 = vector.multi_reduction <add>, %64, %cst_48 [1] : vector<64x16xf32> to vector<64xf32>
      %66 = vector.shape_cast %65 : vector<64xf32> to vector<64x1xf32>
      %67 = tpu.transpose %66, [1, 0] : vector<64x1xf32> -> vector<1x64xf32>
      %c0_49 = arith.constant 0 : index
      %c0_50 = arith.constant 0 : index
      %68 = vector.load %arg10[%c0_49, %c0_50] : memref<1x64xf32, #tpu.memory_space<vmem>>, vector<1x64xf32>
      tpu.vector_store %arg10[%c0_49, %c0_50], %67 {strides = array<i32>} : memref<1x64xf32, #tpu.memory_space<vmem>>, vector<1x64xf32>,
      %cst_51 = arith.constant -1.000000e+30 : f32
      %69 = vector.broadcast %cst_51 : f32 to vector<64x1xf32>
      %c0_52 = arith.constant 0 : index
      %c0_53 = arith.constant 0 : index
      %70 = vector.load %arg11[%c0_52, %c0_53] : memref<64x1xf32, #tpu.memory_space<vmem>>, vector<64x1xf32>
      tpu.vector_store %arg11[%c0_52, %c0_53], %69 {strides = array<i32>} : memref<64x1xf32, #tpu.memory_space<vmem>>, vector<64x1xf32>,
      %cst_54 = arith.constant 0.000000e+00 : f32
      %71 = vector.broadcast %cst_54 : f32 to vector<64x1xf32>
      %c0_55 = arith.constant 0 : index
      %c0_56 = arith.constant 0 : index
      %72 = vector.load %arg12[%c0_55, %c0_56] : memref<64x1xf32, #tpu.memory_space<vmem>>, vector<64x1xf32>
      tpu.vector_store %arg12[%c0_55, %c0_56], %71 {strides = array<i32>} : memref<64x1xf32, #tpu.memory_space<vmem>>, vector<64x1xf32>,
      %cst_57 = arith.constant 0.000000e+00 : f32
      %73 = vector.broadcast %cst_57 : f32 to vector<64x16xf32>
      %c0_58 = arith.constant 0 : index
      %c0_59 = arith.constant 0 : index
      %74 = vector.load %arg13[%c0_58, %c0_59] : memref<64x16xf32, #tpu.memory_space<vmem>>, vector<64x16xf32>
      tpu.vector_store %arg13[%c0_58, %c0_59], %73 {strides = array<i32>} : memref<64x16xf32, #tpu.memory_space<vmem>>, vector<64x16xf32>,
    } else {
    }
    %c0 = arith.constant 0 : index
    %c0_1 = arith.constant 0 : index
    %3 = vector.load %arg8[%c0, %c0_1] : memref<64x16xf32, #tpu.memory_space<vmem>>, vector<64x16xf32>
    %c0_2 = arith.constant 0 : index
    %c0_3 = arith.constant 0 : index
    %4 = vector.load %arg10[%c0_2, %c0_3] : memref<1x64xf32, #tpu.memory_space<vmem>>, vector<1x64xf32>
    %c0_4 = arith.constant 0 : index
    %c0_5 = arith.constant 0 : index
    %5 = vector.load %arg9[%c0_4, %c0_5] : memref<64x1xf32, #tpu.memory_space<vmem>>, vector<64x1xf32>
    %6 = vector.broadcast %5 : vector<64x1xf32> to vector<64x64xf32>
    %7 = vector.broadcast %4 : vector<1x64xf32> to vector<64x64xf32>
    %8 = arith.addf %6, %7 : vector<64x64xf32>
    %cst = arith.constant 0.000000e+00 : f32
    %9 = vector.broadcast %cst : f32 to vector<64x64xf32>
    %10 = arith.cmpf ogt, %8, %9 : vector<64x64xf32>
    %cst_6 = arith.constant 2.000000e-01 : f32
    %11 = vector.broadcast %cst_6 : f32 to vector<64x64xf32>
    %12 = arith.mulf %11, %8 : vector<64x64xf32>
    %13 = arith.select %10, %8, %12 : vector<64x64xi1>, vector<64x64xf32>
    %cst_7 = arith.constant 0.000000e+00 : f32
    %14 = vector.broadcast %cst_7 : f32 to vector<64x64xf32>
    %15 = arith.subf %14, %13 : vector<64x64xf32>
    %c0_8 = arith.constant 0 : index
    %c0_9 = arith.constant 0 : index
    %16 = vector.load %arg6[%c0_8, %c0_9] : memref<64x64xi8, #tpu.memory_space<vmem>>, vector<64x64xi8>
    %c0_i8 = arith.constant 0 : i8
    %17 = vector.broadcast %c0_i8 : i8 to vector<64x64xi8>
    %18 = arith.cmpi ne, %16, %17 : vector<64x64xi8>
    %cst_10 = arith.constant -1.000000e+30 : f32
    %19 = vector.broadcast %cst_10 : f32 to vector<64x64xf32>
    %20 = arith.select %18, %15, %19 : vector<64x64xi1>, vector<64x64xf32>
    %c0_11 = arith.constant 0 : index
    %c0_12 = arith.constant 0 : index
    %21 = vector.load %arg11[%c0_11, %c0_12] : memref<64x1xf32, #tpu.memory_space<vmem>>, vector<64x1xf32>
    %cst_13 = arith.constant dense<0xFF800000> : vector<64xf32>
    %22 = vector.multi_reduction <maximumf>, %20, %cst_13 [1] : vector<64x64xf32> to vector<64xf32>
    %23 = vector.shape_cast %22 : vector<64xf32> to vector<64x1xf32>
    %24 = arith.maximumf %21, %23 : vector<64x1xf32>
    %25 = vector.broadcast %24 : vector<64x1xf32> to vector<64x64xf32>
    %26 = arith.subf %20, %25 : vector<64x64xf32>
    %27 = math.exp %26 : vector<64x64xf32>
    %cst_14 = arith.constant 0.000000e+00 : f32
    %28 = vector.broadcast %cst_14 : f32 to vector<64x64xf32>
    %29 = arith.select %18, %27, %28 : vector<64x64xi1>, vector<64x64xf32>
    %c0_15 = arith.constant 0 : index
    %c0_16 = arith.constant 0 : index
    %30 = vector.load %arg11[%c0_15, %c0_16] : memref<64x1xf32, #tpu.memory_space<vmem>>, vector<64x1xf32>
    %31 = arith.subf %30, %24 : vector<64x1xf32>
    %32 = math.exp %31 : vector<64x1xf32>
    %c0_17 = arith.constant 0 : index
    %c0_18 = arith.constant 0 : index
    %33 = vector.load %arg12[%c0_17, %c0_18] : memref<64x1xf32, #tpu.memory_space<vmem>>, vector<64x1xf32>
    %34 = arith.mulf %32, %33 : vector<64x1xf32>
    %cst_19 = arith.constant dense<0.000000e+00> : vector<64xf32>
    %35 = vector.multi_reduction <add>, %29, %cst_19 [1] : vector<64x64xf32> to vector<64xf32>
    %36 = vector.shape_cast %35 : vector<64xf32> to vector<64x1xf32>
    %37 = arith.addf %34, %36 : vector<64x1xf32>
    %c0_20 = arith.constant 0 : index
    %c0_21 = arith.constant 0 : index
    %38 = vector.load %arg12[%c0_20, %c0_21] : memref<64x1xf32, #tpu.memory_space<vmem>>, vector<64x1xf32>
    tpu.vector_store %arg12[%c0_20, %c0_21], %37 {strides = array<i32>} : memref<64x1xf32, #tpu.memory_space<vmem>>, vector<64x1xf32>,
    %c0_22 = arith.constant 0 : index
    %c0_23 = arith.constant 0 : index
    %39 = vector.load %arg13[%c0_22, %c0_23] : memref<64x16xf32, #tpu.memory_space<vmem>>, vector<64x16xf32>
    %40 = vector.broadcast %32 : vector<64x1xf32> to vector<64x16xf32>
    %41 = arith.mulf %40, %39 : vector<64x16xf32>
    %cst_24 = arith.constant dense<0.000000e+00> : vector<64x16xf32>
    %42 = tpu.matmul %29, %3, %cst_24 {dimension_numbers = #tpu.dot_dimension_numbers<[1], [0], [0], [1], [0, 0, 1, 1], [], []>} : vector<64x64xf32>, vector<64x16xf32>, vector<64x16xf32> -> vector<64x16xf32>
    %43 = arith.addf %41, %42 : vector<64x16xf32>
    %c0_25 = arith.constant 0 : index
    %c0_26 = arith.constant 0 : index
    %44 = vector.load %arg13[%c0_25, %c0_26] : memref<64x16xf32, #tpu.memory_space<vmem>>, vector<64x16xf32>
    tpu.vector_store %arg13[%c0_25, %c0_26], %43 {strides = array<i32>} : memref<64x16xf32, #tpu.memory_space<vmem>>, vector<64x16xf32>,
    %c0_27 = arith.constant 0 : index
    %c0_28 = arith.constant 0 : index
    %45 = vector.load %arg11[%c0_27, %c0_28] : memref<64x1xf32, #tpu.memory_space<vmem>>, vector<64x1xf32>
    tpu.vector_store %arg11[%c0_27, %c0_28], %24 {strides = array<i32>} : memref<64x1xf32, #tpu.memory_space<vmem>>, vector<64x1xf32>,
    %c0_i32_29 = arith.constant 0 : i32
    %46 = arith.cmpi eq, %arg1, %c0_i32_29 : i32
    %47 = arith.extui %46 : i1 to i32
    %c0_i32_30 = arith.constant 0 : i32
    %48 = arith.cmpi ne, %47, %c0_i32_30 : i32
    scf.if %48 {
      %c0_31 = arith.constant 0 : index
      %c0_32 = arith.constant 0 : index
      %49 = vector.load %arg12[%c0_31, %c0_32] : memref<64x1xf32, #tpu.memory_space<vmem>>, vector<64x1xf32>
      %cst_33 = arith.constant 1.000000e-30 : f32
      %50 = vector.broadcast %cst_33 : f32 to vector<64x1xf32>
      %51 = arith.maximumf %49, %50 : vector<64x1xf32>
      %52 = tpu.reciprocal %51 {approx = true} : vector<64x1xf32> -> vector<64x1xf32>
      %c0_34 = arith.constant 0 : index
      %c0_35 = arith.constant 0 : index
      %53 = vector.load %arg13[%c0_34, %c0_35] : memref<64x16xf32, #tpu.memory_space<vmem>>, vector<64x16xf32>
      %54 = vector.broadcast %52 : vector<64x1xf32> to vector<64x16xf32>
      %55 = arith.mulf %53, %54 : vector<64x16xf32>
      %cst_36 = arith.constant 0.000000e+00 : f32
      %56 = vector.broadcast %cst_36 : f32 to vector<64x16xf32>
      %57 = arith.cmpf ogt, %55, %56 : vector<64x16xf32>
      %cst_37 = arith.constant 0.000000e+00 : f32
      %58 = vector.broadcast %cst_37 : f32 to vector<64x16xf32>
      %59 = arith.minimumf %55, %58 : vector<64x16xf32>
      %60 = math.exp %59 : vector<64x16xf32>
      %cst_38 = arith.constant 1.000000e+00 : f32
      %61 = vector.broadcast %cst_38 : f32 to vector<64x16xf32>
      %62 = arith.subf %60, %61 : vector<64x16xf32>
      %63 = arith.select %57, %55, %62 : vector<64x16xi1>, vector<64x16xf32>
      %c0_39 = arith.constant 0 : index
      %c0_40 = arith.constant 0 : index
      %c0_41 = arith.constant 0 : index
      %64 = vector.load %arg7[%c0_39, %c0_40, %c0_41] : memref<1x64x16xf32, #tpu.memory_space<vmem>>, vector<1x64x16xf32>
      %65 = vector.shape_cast %64 : vector<1x64x16xf32> to vector<64x16xf32>
      %66 = vector.shape_cast %63 : vector<64x16xf32> to vector<1x64x16xf32>
      tpu.vector_store %arg7[%c0_39, %c0_40, %c0_41], %66 {strides = array<i32>} : memref<1x64x16xf32, #tpu.memory_space<vmem>>, vector<1x64x16xf32>,
    } else {
    }
    return
  }
  func.func @transform_0(%arg0: i32, %arg1: i32) -> (i32, i32) {
    %c0_i32 = arith.constant 0 : i32
    %c0_i32_0 = arith.constant 0 : i32
    %c0_i32_1 = arith.constant 0 : i32
    return %c0_i32, %c0_i32_0 : i32, i32
  }
  func.func @transform_1(%arg0: i32, %arg1: i32) -> (i32, i32, i32) {
    %c0_i32 = arith.constant 0 : i32
    %c0_i32_0 = arith.constant 0 : i32
    %c0_i32_1 = arith.constant 0 : i32
    return %arg0, %c0_i32, %c0_i32_0 : i32, i32, i32
  }
  func.func @transform_2(%arg0: i32, %arg1: i32) -> (i32, i32, i32) {
    %c0_i32 = arith.constant 0 : i32
    %c0_i32_0 = arith.constant 0 : i32
    %c0_i32_1 = arith.constant 0 : i32
    return %arg0, %c0_i32, %c0_i32_0 : i32, i32, i32
  }
  func.func @transform_3(%arg0: i32, %arg1: i32) -> (i32, i32, i32) {
    %c0_i32 = arith.constant 0 : i32
    %c0_i32_0 = arith.constant 0 : i32
    %c0_i32_1 = arith.constant 0 : i32
    return %arg0, %c0_i32, %c0_i32_0 : i32, i32, i32
  }
  func.func @transform_4(%arg0: i32, %arg1: i32) -> (i32, i32) {
    %c0_i32 = arith.constant 0 : i32
    %c0_i32_0 = arith.constant 0 : i32
    return %c0_i32, %arg1 : i32, i32
  }
  func.func @transform_5(%arg0: i32, %arg1: i32) -> (i32, i32, i32) {
    %c0_i32 = arith.constant 0 : i32
    %c0_i32_0 = arith.constant 0 : i32
    %c0_i32_1 = arith.constant 0 : i32
    return %arg0, %c0_i32, %c0_i32_0 : i32, i32, i32
  }
}

</mosaic_0001>

<bundles_post_ra>
// kernel: tpu_custom_call.1
= control target key start
LH: loop header
LB: loop body
LE: loop exit
PB: predicated region body
PF: predicated region fallthrough
CT: control target
= control target key end

     0   :  { %s1680_s18 = smov 0   ;;  %s1682_s19 = smov 0   ;;  %s2139_s0 = inlined_call_operand.vmem [shape: f32[64,32], index: 0, kind: input, shape index: {}]   ;;  %s2140_s1 = inlined_call_operand.vmem [shape: f32[4,32,16], index: 1, kind: input, shape index: {}]   ;;  %s2141_s2 = inlined_call_operand.vmem [shape: f32[4,1,16], index: 2, kind: input, shape index: {}]   ;;  %s2142_s3 = inlined_call_operand.vmem [shape: f32[4,1,16], index: 3, kind: input, shape index: {}]   ;;  %s2143_s4 = inlined_call_operand.vmem [shape: s8[64,64], index: 4, kind: input, shape index: {}]   ;;  %s2144_s5 = inlined_call_operand.vmem [shape: f32[4,64,16], index: 5, kind: output, shape index: {}]  }
   0x1   :  { %s1684_s20 = smov 0  }
   0x2 LB: > { %s27_s21 = sadd.s32 1, %s1641_s19  ;;  %p1402_p0 = scmp.ge.s32.totalorder %s1645_s20, 1  ;;  %s1645_s20 = sphi %s1684_s20, %s15_s20   ;;  %s1641_s19 = sphi %s1682_s19, %s2166_s19   ;;  %s1637_s18 = sphi %s1680_s18, %s2165_s18  }
   0x3   : > { %p29_p1 = scmp.ge.s32.totalorder %s27_s21, 4  ;;  %p224_p2 = scmp.lt.s32.totalorder %s1645_s20, 5 }
   0x5   : > { %s2168_s21 = smov (%p29_p1, %s27_s21), 0  ;;  %p225_p3 = pnand %p1402_p0, %p224_p2 }
   0x6   : > { %p262_p4 = scmp.lt.s32.totalorder (!%p225_p3), %s1637_s18, 3 }
   0x7   : > { %228 = sbr.rel (%p225_p3) target bundleno = 1208 (0x4b8), region = 40 }
   0xc   : > { %v288_v0 = vld [vmem:[%s2139_s0] sm:$0xff]  ;;  %vm300_vm0 = vcmask 261120   ;;  %s2170_s18 = smov (!%p262_p4, %s1637_s18), 3  ;;  %v289_v5 = vld [vmem:[%s2139_s0 + $0x8] sm:$0xff]  ;;  %v290_v6 = vld [vmem:[%s2139_s0 + $0x10] sm:$0xff]  ;;  %vm430_vm1 = vcmask 130048  }
   0xd   : > { %1474 = vmatprep.mubr.msk.f32.mxu0 %vm300_vm0, %v288_v0  ;;  %s1436_s24 = sshll.u32 %s2170_s18, 5  ;;  %v291_v7 = vld [vmem:[%s2139_s0 + $0x18] sm:$0xff]  ;;  %v292_v8 = vld [vmem:[%s2139_s0 + $0x20] sm:$0xff]  ;;  %v293_v9 = vld [vmem:[%s2139_s0 + $0x28] sm:$0xff]  ;;  %s272_s23 = scalar_lea.vmem %s2142_s3, %s2170_s18  ;;  %v1647_v62 = vmov 0   ;;  %vm478_vm2 = vcmask 7168  }
   0xe   : > { %s266_s27 = scalar_lea.vmem %s2140_s1, %s1436_s24  ;;  %v294_v10 = vld [vmem:[%s2139_s0 + $0x30] sm:$0xff]  ;;  %v295_v11 = vld [vmem:[%s2139_s0 + $0x38] sm:$0xff]  ;;  %v1740_v12 = vld [vmem:[%s272_s23] ss:$0 sm:$0xff]  ;;  %s269_s26 = scalar_lea.vmem %s2141_s2, %s2170_s18  ;;  %1557 = vset.pattern.permute.xlu0 %v1647_v62  ;;  %1558 = vset.pattern.permute.xlu1 %v1647_v62  ;;  %vm558_vm5 = vcmask 516096   ;;  %vm765_vm12 = vcmask 523264  }
   0xf   : > { %v299_v1 = vld [vmem:[%s266_s27 + $0x18] sm:$0xff]  ;;  %v298_v2 = vld [vmem:[%s266_s27 + $0x10] sm:$0xff]  ;;  %v297_v3 = vld [vmem:[%s266_s27 + $0x8] sm:$0xff]  ;;  %s1437_s6 = sshll.u32 %s2170_s18, 6 }
  0x10   : > { %1466 = vmatprep.subr.mxu0 %v299_v1  ;;  %v296_v4 = vld [vmem:[%s266_s27] sm:$0xff]  ;;  %s2112_s9 = scalar_lea.vmem %s2144_s5, %s1437_s6 }
  0x11   : > { %1467 = vmatpush3.msra.mxu0 %v299_v1  ;;  %v1415_v20 = vld [vmem:[%s269_s26] ss:$0 sm:$0xff] }
  0x12   : > { %1468 = vmatprep.subr.mxu0 %v298_v2 }
  0x13   : > { %1469 = vmatpush3.msra.mxu0 %v298_v2 }
  0x14   : > { %1470 = vmatprep.subr.mxu0 %v297_v3 }
  0x15   : > { %1471 = vmatpush3.msra.mxu0 %v297_v3 }
  0x16   : > { %1472 = vmatprep.subr.mxu0 %v296_v4 }
  0x17   : > { %1473 = vmatpush3.msra.mxu0 %v296_v4 }
  0x18   : > { %1475 = vmatmul.mubr.msk.f32.vlgmr.msra.gmra.mxu0 %vm300_vm0, %v289_v5 }
  0x19   : > { %1477 = vmatprep.mubr.msk.f32.mxu0 %vm300_vm0, %v290_v6 }
  0x1c   : > { %1478 = vmatmul.mubr.msk.f32.gmra.mxu0 %vm300_vm0, %v291_v7 }
  0x1d   : > { %1480 = vmatprep.mubr.msk.f32.mxu0 %vm300_vm0, %v292_v8 }
  0x20   : > { %1481 = vmatmul.mubr.msk.f32.gmra.mxu0 %vm300_vm0, %v293_v9 }
  0x21   : > { %1483 = vmatprep.mubr.msk.f32.mxu0 %vm300_vm0, %v294_v10 }
  0x24   : > { %1484 = vmatmul.mubr.msk.f32.gmra.mxu0 %vm300_vm0, %v295_v11 }
  0xd8   : > { %v1476_v13 = vpop.f32.mrf.mxu0 }
  0xd9   : > { %432 = vst.msk [vmem:[#allocation2 + $0x8] sm:$0xff] %vm430_vm1, %v1476_v13  ;;  %v495_v14 = vmul.f32 %v1476_v13, %v1740_v12  ;;  %v447_v37 = vmul.f32 %v1476_v13, %v1415_v20 }
  0xda   : > { %v391_v15 = vpop.f32.mrf.mxu0 }
  0xdb   : > { %431 = vst.msk [vmem:[#allocation2] sm:$0xff] %vm430_vm1, %v391_v15  ;;  %v505_v16 = vsel %vm430_vm1, %v495_v14, 0.0  ;;  %v446_v32 = vmul.f32 %v1415_v20, %v391_v15  ;;  %v457_v41 = vsel %vm430_vm1, %v447_v37, 0.0  ;;  %v494_v42 = vmul.f32 %v1740_v12, %v391_v15 }
  0xdc   : > { %506 = vadd.xlane.f32.xlu1 %v505_v16  ;;  %v1479_v17 = vpop.f32.mrf.mxu0 }
  0xdd   : > { %434 = vst.msk [vmem:[#allocation2 + $0x18] sm:$0xff] %vm430_vm1, %v1479_v17  ;;  %v497_v18 = vmul.f32 %v1479_v17, %v1740_v12  ;;  %v449_v25 = vmul.f32 %v1479_v17, %v1415_v20  ;;  %v454_v36 = vsel %vm430_vm1, %v446_v32, 0.0  ;;  %v502_v46 = vsel %vm430_vm1, %v494_v42, 0.0 }
  0xde   : > { %v401_v19 = vpop.f32.mrf.mxu0 }
  0xdf   : > { %433 = vst.msk [vmem:[#allocation2 + $0x10] sm:$0xff] %vm430_vm1, %v401_v19  ;;  %v511_v21 = vsel %vm430_vm1, %v497_v18, 0.0  ;;  %v448_v22 = vmul.f32 %v1415_v20, %v401_v19  ;;  %v463_v31 = vsel %vm430_vm1, %v449_v25, 0.0  ;;  %v496_v49 = vmul.f32 %v1740_v12, %v401_v19 }
  0xe0   : > { %512 = vadd.xlane.f32.xlu1 %v511_v21  ;;  %v1482_v23 = vpop.f32.mrf.mxu0  ;;  %v585_v56 = vld [vmem:[#allocation2 + $0x8] sm:$0xff] }
  0xe1   : > { %436 = vst.msk [vmem:[#allocation2 + $0x28] sm:$0xff] %vm430_vm1, %v1482_v23  ;;  %v460_v24 = vsel %vm430_vm1, %v448_v22, 0.0  ;;  %v451_v26 = vmul.f32 %v1482_v23, %v1415_v20  ;;  %v499_v27 = vmul.f32 %v1482_v23, %v1740_v12  ;;  %v508_v52 = vsel %vm430_vm1, %v496_v49, 0.0 }
  0xe2   : > { %461 = vadd.xlane.f32.xlu0 %v460_v24  ;;  %v411_v28 = vpop.f32.mrf.mxu0  ;;  %v584_v60 = vld [vmem:[#allocation2] sm:$0xff]  ;;  %v1648_v23 = vmov -1e+30  }
  0xe3   : > { %435 = vst.msk [vmem:[#allocation2 + $0x20] sm:$0xff] %vm430_vm1, %v411_v28  ;;  %v469_v29 = vsel %vm430_vm1, %v451_v26, 0.0  ;;  %v517_v33 = vsel %vm430_vm1, %v499_v27, 0.0  ;;  %v450_v34 = vmul.f32 %v1415_v20, %v411_v28  ;;  %v498_v54 = vmul.f32 %v1740_v12, %v411_v28  ;;  %v687_v28 = vld [vmem:[%s2143_s4] sm:$0xff] }
  0xe4   : > { %v1485_v30 = vpop.f32.mrf.mxu0  ;;  %470 = vadd.xlane.f32.xlu1 %v469_v29  ;;  %v587_v50 = vld [vmem:[#allocation2 + $0x18] sm:$0xff]  ;;  %561 = vst.msk [vmem:[#allocation5 + $0x8] sm:$0xff] %vm478_vm2, %v1648_v23  ;;  %560 = vst.msk [vmem:[#allocation5] sm:$0xff] %vm478_vm2, %v1648_v23  ;;  %vm689_vm3 = vnez %v687_v28 }
  0xe5   : > { %438 = vst.msk [vmem:[#allocation2 + $0x38] sm:$0xff] %vm430_vm1, %v1485_v30  ;;  %v466_v38 = vsel %vm430_vm1, %v450_v34, 0.0  ;;  %v453_v40 = vmul.f32 %v1485_v30, %v1415_v20  ;;  %v501_v53 = vmul.f32 %v1485_v30, %v1740_v12  ;;  %v514_v58 = vsel %vm430_vm1, %v498_v54, 0.0 }
  0xe6   : > { %464 = vadd.xlane.f32.xlu0 %v463_v31  ;;  %v421_v35 = vpop.f32.mrf.mxu0  ;;  %v586_v55 = vld [vmem:[#allocation2 + $0x10] sm:$0xff]  ;;  %562 = vst.msk [vmem:[#allocation5 + $0x10] sm:$0xff] %vm478_vm2, %v1648_v23  ;;  %563 = vst.msk [vmem:[#allocation5 + $0x18] sm:$0xff] %vm478_vm2, %v1648_v23  ;;  %v691_v30 = vsel %vm689_vm3, 16843009, %v1647_v62 }
  0xe7   : > { %437 = vst.msk [vmem:[#allocation2 + $0x30] sm:$0xff] %vm430_vm1, %v421_v35  ;;  %v475_v45 = vsel %vm430_vm1, %v453_v40, 0.0  ;;  %v452_v48 = vmul.f32 %v1415_v20, %v421_v35  ;;  %v523_v57 = vsel %vm430_vm1, %v501_v53, 0.0  ;;  %v500_v59 = vmul.f32 %v1740_v12, %v421_v35 }
  0xe8   : > { %518 = vadd.xlane.f32.xlu1 %v517_v33  ;;  %v589_v44 = vld [vmem:[#allocation2 + $0x28] sm:$0xff]  ;;  %564 = vst.msk [vmem:[#allocation5 + $0x20] sm:$0xff] %vm478_vm2, %v1648_v23  ;;  %565 = vst.msk [vmem:[#allocation5 + $0x28] sm:$0xff] %vm478_vm2, %v1648_v23  ;;  %v694_v32 = vunpack.c.1.s8 %v691_v30  ;;  %v693_v34 = vunpack.c.0.s8 %v691_v30  ;;  %v695_v40 = vunpack.c.2.s8 %v691_v30 }
  0xe9   : > { %v472_v51 = vsel %vm430_vm1, %v452_v48, 0.0  ;;  %v520_v61 = vsel %vm430_vm1, %v500_v59, 0.0  ;;  %566 = vst.msk [vmem:[#allocation5 + $0x30] sm:$0xff] %vm478_vm2, %v1648_v23  ;;  %567 = vst.msk [vmem:[#allocation5 + $0x38] sm:$0xff] %vm478_vm2, %v1648_v23  ;;  %v688_v33 = vld [vmem:[%s2143_s4 + $0x8] sm:$0xff] }
  0xea   : > { %455 = vadd.xlane.f32.xlu0 %v454_v36  ;;  %v588_v47 = vld [vmem:[#allocation2 + $0x20] sm:$0xff]  ;;  %vm690_vm4 = vnez %v688_v33  ;;  %v703_v35 = vpack.c.b16 %v694_v32, %v694_v32  ;;  %v696_v36 = vunpack.c.3.s8 %v691_v30 }
  0xec   : > { %v591_v39 = vld [vmem:[#allocation2 + $0x38] sm:$0xff]  ;;  %467 = vadd.xlane.f32.xlu1 %v466_v38  ;;  %v701_v38 = vpack.c.b16 %v693_v34, %v693_v34  ;;  %v707_v42 = vpack.c.b16 %v696_v36, %v696_v36 }
  0xed   : > { %1486 = vmatprep.subr.mxu0 %v591_v39  ;;  %1514 = vmatprep.subr.mxu1 %v591_v39 }
  0xee   : > { %458 = vadd.xlane.f32.xlu0 %v457_v41  ;;  %1487 = vmatpush3.msra.mxu0 %v591_v39  ;;  %v590_v43 = vld [vmem:[#allocation2 + $0x30] sm:$0xff]  ;;  %v704_v41 = vpack.c.b8 %v703_v35, %v703_v35 }
  0xef   : > { %1522 = vmatpush3.msra.mxu1 %v591_v39  ;;  %1488 = vmatprep.subr.mxu0 %v590_v43  ;;  %v1812_v39 = vsel %vm690_vm4, 16843009, %v1647_v62 }
  0xf0   : > { %1515 = vmatprep.subr.mxu1 %v590_v43  ;;  %1489 = vmatpush3.msra.mxu0 %v590_v43  ;;  %vm718_vm6 = vnez %v704_v41  ;;  %v697_v49 = vunpack.c.0.s8 %v1812_v39 }
  0xf1   : > { %1523 = vmatpush3.msra.mxu1 %v590_v43  ;;  %1490 = vmatprep.subr.mxu0 %v589_v44 }
  0xf2   : > { %1516 = vmatprep.subr.mxu1 %v589_v44  ;;  %503 = vadd.xlane.f32.xlu0 %v502_v46  ;;  %v705_v46 = vpack.c.b16 %v695_v40, %v695_v40 }
  0xf3   : > { %476 = vadd.xlane.f32.xlu1 %v475_v45  ;;  %1491 = vmatpush3.msra.mxu0 %v589_v44  ;;  %v698_v45 = vunpack.c.1.s8 %v1812_v39 }
  0xf4   : > { %1524 = vmatpush3.msra.mxu1 %v589_v44  ;;  %1492 = vmatprep.subr.mxu0 %v588_v47  ;;  %v702_v44 = vpack.c.b8 %v701_v38, %v701_v38 }
  0xf5   : > { %1517 = vmatprep.subr.mxu1 %v588_v47  ;;  %1493 = vmatpush3.msra.mxu0 %v588_v47  ;;  %v711_v48 = vpack.c.b16 %v698_v45, %v698_v45 }
  0xf6   : > { %1525 = vmatpush3.msra.mxu1 %v588_v47  ;;  %1494 = vmatprep.subr.mxu0 %v587_v50  ;;  %v708_v47 = vpack.c.b8 %v707_v42, %v707_v42  ;;  %vm717_vm7 = vnez %v702_v44 }
  0xf7   : > { %1518 = vmatprep.subr.mxu1 %v587_v50  ;;  %509 = vadd.xlane.f32.xlu0 %v508_v52  ;;  %v725_v52 = vsel %vm717_vm7, 16843009, %v1647_v62  ;;  %v712_v54 = vpack.c.b8 %v711_v48, %v711_v48 }
  0xf8   : > { %473 = vadd.xlane.f32.xlu1 %v472_v51  ;;  %1495 = vmatpush3.msra.mxu0 %v587_v50  ;;  %v706_v51 = vpack.c.b8 %v705_v46, %v705_v46  ;;  %vm720_vm8 = vnez %v708_v47 }
  0xf9   : > { %1526 = vmatpush3.msra.mxu1 %v587_v50  ;;  %1496 = vmatprep.subr.mxu0 %v586_v55  ;;  %v726_v50 = vsel %vm718_vm6, 16843009, %v1647_v62  ;;  %vm1834_vm15 = vnez %v712_v54 }
  0xfa   : > { %1519 = vmatprep.subr.mxu1 %v586_v55  ;;  %1497 = vmatpush3.msra.mxu0 %v586_v55  ;;  %vm1825_vm9 = vnez %v706_v51 }
  0xfb   : > { %1527 = vmatpush3.msra.mxu1 %v586_v55  ;;  %1498 = vmatprep.subr.mxu0 %v585_v56  ;;  %v709_v55 = vpack.c.b16 %v697_v49, %v697_v49 }
  0xfc   : > { %1520 = vmatprep.subr.mxu1 %v585_v56  ;;  %515 = vadd.xlane.f32.xlu0 %v514_v58  ;;  %v734_v58 = vunpack.c.0.s8 %v726_v50 }
  0xfd   : > { %524 = vadd.xlane.f32.xlu1 %v523_v57  ;;  %1499 = vmatpush3.msra.mxu0 %v585_v56 }
  0xfe   : > { %1528 = vmatpush3.msra.mxu1 %v585_v56  ;;  %1500 = vmatprep.subr.mxu0 %v584_v60  ;;  %vm1830_vm14 = vcmp.ne.s32.totalorder %v734_v58, 0 }
  0xff   : > { %1521 = vmatprep.subr.mxu1 %v584_v60  ;;  %1501 = vmatpush3.msra.mxu0 %v584_v60 }
 0x100   : > { %1529 = vmatpush3.msra.mxu1 %v584_v60  ;;  %521 = vadd.xlane.f32.xlu0 %v520_v61  ;;  %v733_v61 = vunpack.c.0.s8 %v725_v52 }
 0x102   : > { %vm1841_vm0 = vcmp.ne.s32.totalorder %v733_v61, 0 }
 0x165   : > { %v507_v63 = vpop.xlane.xlu1 %506 }
 0x169   : > { %v513_v0 = vpop.xlane.xlu1 %512 }
 0x16b   : > { %v462_v1 = vpop.xlane.xlu0 %461 }
 0x16c   : > { %481 = vst.msk [vmem:[#allocation3 + $0x10] sm:$0xff] %vm478_vm2, %v462_v1 }
 0x16d   : > { %v471_v2 = vpop.xlane.xlu1 %470 }
 0x16e   : > { %484 = vst.msk [vmem:[#allocation3 + $0x28] sm:$0xff] %vm478_vm2, %v471_v2 }
 0x16f   : > { %v465_v3 = vpop.xlane.xlu0 %464 }
 0x170   : > { %482 = vst.msk [vmem:[#allocation3 + $0x18] sm:$0xff] %vm478_vm2, %v465_v3 }
 0x171   : > { %v519_v4 = vpop.xlane.xlu1 %518 }
 0x173   : > { %v456_v5 = vpop.xlane.xlu0 %455  ;;  %v595_v6 = vld [vmem:[#allocation3 + $0x10] sm:$0xff] }
 0x174   : > { %479 = vst.msk [vmem:[#allocation3] sm:$0xff] %vm478_vm2, %v456_v5  ;;  %613 = vperm.xlu0 %1557, %v595_v6   ;;  %v699_v5 = vunpack.c.2.s8 %v1812_v39 }
 0x175   : > { %v468_v7 = vpop.xlane.xlu1 %467  ;;  %v598_v14 = vld [vmem:[#allocation3 + $0x28] sm:$0xff] }
 0x176   : > { %483 = vst.msk [vmem:[#allocation3 + $0x20] sm:$0xff] %vm478_vm2, %v468_v7 }
 0x177   : > { %v459_v8 = vpop.xlane.xlu0 %458  ;;  %v596_v9 = vld [vmem:[#allocation3 + $0x18] sm:$0xff] }
 0x178   : > { %480 = vst.msk [vmem:[#allocation3 + $0x8] sm:$0xff] %vm478_vm2, %v459_v8  ;;  %618 = vperm.xlu1 %1558, %v596_v9  }
 0x17b   : > { %v593_v10 = vld [vmem:[#allocation3] sm:$0xff]  ;;  %v504_v18 = vpop.xlane.xlu0 %503 }
 0x17c   : > { %v477_v11 = vpop.xlane.xlu1 %476  ;;  %603 = vperm.xlu1 %1558, %v593_v10  }
 0x17d   : > { %486 = vst.msk [vmem:[#allocation3 + $0x38] sm:$0xff] %vm478_vm2, %v477_v11  ;;  %v597_v15 = vld [vmem:[#allocation3 + $0x20] sm:$0xff] }
 0x17f   : > { %v594_v12 = vld [vmem:[#allocation3 + $0x8] sm:$0xff] }
 0x180   : > { %608 = vperm.xlu1 %1558, %v594_v12   ;;  %v510_v19 = vpop.xlane.xlu0 %509 }
 0x181   : > { %v474_v13 = vpop.xlane.xlu1 %473 }
 0x182   : > { %485 = vst.msk [vmem:[#allocation3 + $0x30] sm:$0xff] %vm478_vm2, %v474_v13  ;;  %v727_v13 = vsel %vm1825_vm9, 16843009, %v1647_v62 }
 0x184   : > { %628 = vperm.xlu1 %1558, %v598_v14   ;;  %v600_v16 = vld [vmem:[#allocation3 + $0x38] sm:$0xff] }
 0x185   : > { %v516_v20 = vpop.xlane.xlu0 %515 }
 0x186   : > { %v525_v22 = vpop.xlane.xlu1 %524 }
 0x188   : > { %623 = vperm.xlu1 %1558, %v597_v15  }
 0x189   : > { %v599_v17 = vld [vmem:[#allocation3 + $0x30] sm:$0xff]  ;;  %v522_v21 = vpop.xlane.xlu0 %521 }
 0x18c   : > { %638 = vperm.xlu1 %1558, %v600_v16  }
 0x190   : > { %633 = vperm.xlu1 %1558, %v599_v17  }
 0x1b9   : > { %526 = vxpose.xlu1.b32.start [1/8] (short) (narrow) %v504_v18, 8 }
 0x1bd   : > { %527 = vxpose.xlu1.b32.cont [2/8] (short) (narrow) %v507_v63, 8  ;;  %v728_v63 = vsel %vm720_vm8, 16843009, %v1647_v62 }
 0x1be   : > { %v736_v12 = vunpack.c.0.s8 %v728_v63 }
 0x1c0   : > { %vm1861_vm4 = vcmp.ne.s32.totalorder %v736_v12, 0 }
 0x1c1   : > { %528 = vxpose.xlu1.b32.cont [3/8] (short) (narrow) %v510_v19, 8 }
 0x1c5   : > { %529 = vxpose.xlu1.b32.cont [4/8] (short) (narrow) %v513_v0, 8 }
 0x1c9   : > { %530 = vxpose.xlu1.b32.cont [5/8] (short) (narrow) %v516_v20, 8  ;;  %v710_v20 = vpack.c.b8 %v709_v55, %v709_v55 }
 0x1cb   : > { %vm721_vm6 = vnez %v710_v20  ;;  %v1962_v20 = vld [vmem:[#allocation5 + $0x18] sm:$0xff] }
 0x1cd   : > { %531 = vxpose.xlu1.b32.cont [6/8] (short) (narrow) %v519_v4, 8 }
 0x1d1   : > { %532 = vxpose.xlu1.b32.cont [7/8] (short) (narrow) %v522_v21, 8  ;;  %v713_v21 = vpack.c.b16 %v699_v5, %v699_v5 }
 0x1d3   : > { %v714_v34 = vpack.c.b8 %v713_v21, %v713_v21 }
 0x1d5   : > { %533 = vxpose.xlu1.b32.end [8/8] (short) (narrow) %v525_v22, 8  ;;  %v700_v22 = vunpack.c.3.s8 %v1812_v39  ;;  %vm723_vm9 = vnez %v714_v34 }
 0x1d6   : > { %v731_v52 = vsel %vm723_vm9, 16843009, %v1647_v62 }
 0x1d7   : > { %v715_v35 = vpack.c.b16 %v700_v22, %v700_v22 }
 0x1d9   : > { %v716_v45 = vpack.c.b8 %v715_v35, %v715_v35 }
 0x1ef   : > { %v614_v56 = vpop.permute.xlu0 %613 }
 0x1f3   : > { %v619_v24 = vpop.permute.xlu1 %618 }
 0x1f7   : > { %v604_v25 = vpop.permute.xlu1 %603 }
 0x1fb   : > { %v609_v26 = vpop.permute.xlu1 %608 }
 0x1ff   : > { %v1796_v27 = vpop.permute.xlu1 %628 }
 0x203   : > { %v1801_v29 = vpop.permute.xlu1 %623 }
 0x207   : > { %v1804_v31 = vpop.permute.xlu1 %638 }
 0x20b   : > { %v1809_v37 = vpop.permute.xlu1 %633 }
 0x235   : > { %v542_v43 = vpop.trf.xlu1 }
 0x236   : > { %559 = vst.msk [vmem:[#allocation4] sm:$0x1] %vm558_vm5, %v542_v43  ;;  %v729_v43 = vsel %vm721_vm6, 16843009, %v1647_v62 }
 0x23d   : > { %v1818_v53 = vld [vmem:[#allocation4] ss:$0 sm:$0xff] }
 0x23e   : > { %v648_v57 = vadd.f32 %v1818_v53, %v609_v26  ;;  %v647_v59 = vadd.f32 %v1818_v53, %v604_v25  ;;  %v650_v60 = vadd.f32 %v1818_v53, %v619_v24  ;;  %v649_v0 = vadd.f32 %v1818_v53, %v614_v56 }
 0x23f   : > { %v652_v17 = vadd.f32 %v1818_v53, %v1796_v27  ;;  %v735_v25 = vunpack.c.0.s8 %v727_v13  ;;  %v730_v26 = vsel %vm1834_vm15, 16843009, %v1647_v62  ;;  %v651_v32 = vadd.f32 %v1818_v53, %v1801_v29 }
 0x240   : > { %vm656_vm10 = vcmp.gt.f32.partialorder %v648_v57, 0.0  ;;  %v664_v2 = vmul.f32 0.2, %v648_v57  ;;  %vm655_vm11 = vcmp.gt.f32.partialorder %v647_v59, 0.0  ;;  %v663_v3 = vmul.f32 0.2, %v647_v59 }
 0x241   : > { %vm658_vm13 = vcmp.gt.f32.partialorder %v650_v60, 0.0  ;;  %v666_v4 = vmul.f32 0.2, %v650_v60  ;;  %v665_v16 = vmul.f32 0.2, %v649_v0  ;;  %vm657_vm3 = vcmp.gt.f32.partialorder %v649_v0, 0.0 }
 0x242   : > { %v672_v6 = vsel %vm656_vm10, %v648_v57, %v664_v2  ;;  %v671_v8 = vsel %vm655_vm11, %v647_v59, %v663_v3  ;;  %v668_v30 = vmul.f32 0.2, %v652_v17  ;;  %vm660_vm5 = vcmp.gt.f32.partialorder %v652_v17, 0.0 }
 0x243   : > { %v680_v10 = vsub.f32 0.0, %v672_v6  ;;  %v679_v11 = vsub.f32 0.0, %v671_v8  ;;  %v674_v15 = vsel %vm658_vm13, %v650_v60, %v666_v4  ;;  %v673_v28 = vsel %vm657_vm3, %v649_v0, %v665_v16 }
 0x244   : > { %v682_v24 = vsub.f32 0.0, %v674_v15  ;;  %v681_v38 = vsub.f32 0.0, %v673_v28  ;;  %v738_v39 = vunpack.c.0.s8 %v730_v26  ;;  %vm1873_vm7 = vcmp.ne.s32.totalorder %v735_v25, 0  ;;  %v1953_v15 = vld [vmem:[#allocation5] sm:$0xff]  ;;  %v1972_v25 = vld [vmem:[#allocation5 + $0x10] sm:$0xff] }
 0x245   : > { %v1849_v18 = vsel %vm1830_vm14, %v680_v10, -1e+30  ;;  %v1856_v23 = vsel %vm1841_vm0, %v679_v11, -1e+30  ;;  %v676_v41 = vsel %vm660_vm5, %v652_v17, %v668_v30  ;;  %v667_v29 = vmul.f32 0.2, %v651_v32 }
 0x246   : > { %v769_v19 = vsel %vm765_vm12, %v1849_v18, -inf  ;;  %v766_v33 = vsel %vm765_vm12, %v1856_v23, -inf  ;;  %v1871_v36 = vsel %vm1861_vm4, %v682_v24, -1e+30  ;;  %v653_v42 = vadd.f32 %v1818_v53, %v1809_v37  ;;  %v1948_v11 = vld [vmem:[#allocation5 + $0x8] sm:$0xff] }
 0x247   : > { %770 = vmax.xlane.f32.xlu0 %v769_v19  ;;  %vm659_vm8 = vcmp.gt.f32.partialorder %v651_v32, 0.0  ;;  %v775_v44 = vsel %vm765_vm12, %v1871_v36, -inf  ;;  %v1884_v46 = vsel %vm1873_vm7, %v681_v38, -1e+30  ;;  %v684_v47 = vsub.f32 0.0, %v676_v41  ;;  %v1993_v38 = vld [vmem:[#allocation5 + $0x20] sm:$0xff] }
 0x248   : > { %vm1886_vm10 = vcmp.ne.s32.totalorder %v738_v39, 0  ;;  %v675_v49 = vsel %vm659_vm8, %v651_v32, %v667_v29  ;;  %v737_v37 = vunpack.c.0.s8 %v729_v43  ;;  %v669_v50 = vmul.f32 0.2, %v653_v42  ;;  %v1982_v32 = vld [vmem:[#allocation5 + $0x28] sm:$0xff] }
 0x249   : > { %v654_v51 = vadd.f32 %v1818_v53, %v1804_v31  ;;  %vm661_vm11 = vcmp.gt.f32.partialorder %v653_v42, 0.0  ;;  %v772_v54 = vsel %vm765_vm12, %v1884_v46, -inf  ;;  %vm724_vm13 = vnez %v716_v45 }
 0x24a   : > { %v1897_v55 = vsel %vm1886_vm10, %v684_v47, -1e+30  ;;  %v683_v56 = vsub.f32 0.0, %v675_v49  ;;  %vm1899_vm15 = vcmp.ne.s32.totalorder %v737_v37, 0  ;;  %v677_v58 = vsel %vm661_vm11, %v653_v42, %v669_v50  ;;  %v2003_v42 = vld [vmem:[#allocation5 + $0x30] sm:$0xff]  ;;  %v2013_v47 = vld [vmem:[#allocation5 + $0x38] sm:$0xff] }
 0x24b   : > { %767 = vmax.xlane.f32.xlu0 %v766_v33  ;;  %v739_v59 = vunpack.c.0.s8 %v731_v52  ;;  %v670_v31 = vmul.f32 0.2, %v654_v51  ;;  %vm662_vm3 = vcmp.gt.f32.partialorder %v654_v51, 0.0  ;;  %v732_v53 = vsel %vm724_vm13, 16843009, %v1647_v62 }
 0x24c   : > { %v781_v60 = vsel %vm765_vm12, %v1897_v55, -inf  ;;  %v1908_v61 = vsel %vm1899_vm15, %v683_v56, -1e+30  ;;  %v685_v63 = vsub.f32 0.0, %v677_v58  ;;  %v740_v2 = vunpack.c.0.s8 %v732_v53 }
 0x24d   : > { %vm1910_vm5 = vcmp.ne.s32.totalorder %v739_v59, 0  ;;  %v678_v1 = vsel %vm662_vm3, %v654_v51, %v670_v31  ;;  %v778_v3 = vsel %vm765_vm12, %v1908_v61, -inf  ;;  %v1649_v10 = vmov 0.0  }
 0x24e   : > { %v1918_v62 = vsel %vm1910_vm5, %v685_v63, -1e+30  ;;  %v686_v4 = vsub.f32 0.0, %v678_v1  ;;  %vm1920_vm6 = vcmp.ne.s32.totalorder %v740_v2, 0  ;;  %568 = vst.msk [vmem:[#allocation6] sm:$0xff] %vm478_vm2, %v1649_v10  ;;  %569 = vst.msk [vmem:[#allocation6 + $0x8] sm:$0xff] %vm478_vm2, %v1649_v10 }
 0x24f   : > { %776 = vmax.xlane.f32.xlu0 %v775_v44  ;;  %v784_v6 = vsel %vm765_vm12, %v1918_v62, -inf  ;;  %570 = vst.msk [vmem:[#allocation6 + $0x10] sm:$0xff] %vm478_vm2, %v1649_v10  ;;  %571 = vst.msk [vmem:[#allocation6 + $0x18] sm:$0xff] %vm478_vm2, %v1649_v10 }
 0x250   : > { %v1928_v8 = vsel %vm1920_vm6, %v686_v4, -1e+30  ;;  %572 = vst.msk [vmem:[#allocation6 + $0x20] sm:$0xff] %vm478_vm2, %v1649_v10  ;;  %573 = vst.msk [vmem:[#allocation6 + $0x28] sm:$0xff] %vm478_vm2, %v1649_v10 }
 0x251   : > { %v787_v9 = vsel %vm765_vm12, %v1928_v8, -inf  ;;  %574 = vst.msk [vmem:[#allocation6 + $0x30] sm:$0xff] %vm478_vm2, %v1649_v10  ;;  %575 = vst.msk [vmem:[#allocation6 + $0x38] sm:$0xff] %vm478_vm2, %v1649_v10 }
 0x252   : > { %576 = vst.msk [vmem:[#allocation7] sm:$0xff] %vm430_vm1, %v1649_v10  ;;  %577 = vst.msk [vmem:[#allocation7 + $0x8] sm:$0xff] %vm430_vm1, %v1649_v10 }
 0x253   : > { %773 = vmax.xlane.f32.xlu0 %v772_v54  ;;  %578 = vst.msk [vmem:[#allocation7 + $0x10] sm:$0xff] %vm430_vm1, %v1649_v10  ;;  %579 = vst.msk [vmem:[#allocation7 + $0x18] sm:$0xff] %vm430_vm1, %v1649_v10 }
 0x254   : > { %580 = vst.msk [vmem:[#allocation7 + $0x20] sm:$0xff] %vm430_vm1, %v1649_v10  ;;  %581 = vst.msk [vmem:[#allocation7 + $0x28] sm:$0xff] %vm430_vm1, %v1649_v10 }
 0x255   : > { %582 = vst.msk [vmem:[#allocation7 + $0x30] sm:$0xff] %vm430_vm1, %v1649_v10  ;;  %583 = vst.msk [vmem:[#allocation7 + $0x38] sm:$0xff] %vm430_vm1, %v1649_v10 }
 0x257   : > { %782 = vmax.xlane.f32.xlu0 %v781_v60 }
 0x25b   : > { %779 = vmax.xlane.f32.xlu0 %v778_v3 }
 0x25f   : > { %785 = vmax.xlane.f32.xlu0 %v784_v6 }
 0x263   : > { %788 = vmax.xlane.f32.xlu0 %v787_v9 }
 0x2d0   : > { %v771_v12 = vpop.xlane.xlu0 %770 }
 0x2d1   : > { %v1951_v13 = vmax.f32 %v1948_v11, %v771_v12 }
 0x2d3   : > { %v871_v16 = vsub.f32 %v1948_v11, %v1951_v13  ;;  %1154 = vst.msk [vmem:[#allocation5 + $0x8] sm:$0xff] %vm478_vm2, %v1951_v13 }
 0x2d4   : > { %v768_v17 = vpop.xlane.xlu0 %767 }
 0x2d5   : > { %v1960_v19 = vmax.f32 %v1953_v15, %v768_v17  ;;  %v880_v5 = vmul.f32 1.442695, %v871_v16 }
 0x2d7   : > { %v870_v21 = vsub.f32 %v1953_v15, %v1960_v19  ;;  %1153 = vst.msk [vmem:[#allocation5] sm:$0xff] %vm478_vm2, %v1960_v19  ;;  %800 = vperm.xlu0 %1557, %v1960_v19  }
 0x2d8   : > { %v777_v22 = vpop.xlane.xlu0 %776 }
 0x2d9   : > { %v1970_v24 = vmax.f32 %v1962_v20, %v777_v22  ;;  %v878_v57 = vmul.f32 1.442695, %v870_v21 }
 0x2db   : > { %v873_v26 = vsub.f32 %v1962_v20, %v1970_v24  ;;  %1156 = vst.msk [vmem:[#allocation5 + $0x18] sm:$0xff] %vm478_vm2, %v1970_v24  ;;  %815 = vperm.xlu1 %1558, %v1970_v24  }
 0x2dc   : > { %v774_v28 = vpop.xlane.xlu0 %773 }
 0x2dd   : > { %v1980_v30 = vmax.f32 %v1972_v25, %v774_v28  ;;  %v884_v19 = vmul.f32 1.442695, %v873_v26 }
 0x2df   : > { %v872_v33 = vsub.f32 %v1972_v25, %v1980_v30  ;;  %1155 = vst.msk [vmem:[#allocation5 + $0x10] sm:$0xff] %vm478_vm2, %v1980_v30  ;;  %805 = vperm.xlu1 %1558, %v1951_v13   ;;  %810 = vperm.xlu0 %1557, %v1980_v30  }
 0x2e0   : > { %v783_v34 = vpop.xlane.xlu0 %782 }
 0x2e1   : > { %v1991_v35 = vmax.f32 %v1982_v32, %v783_v34  ;;  %v882_v0 = vmul.f32 1.442695, %v872_v33 }
 0x2e3   : > { %v875_v39 = vsub.f32 %v1982_v32, %v1991_v35  ;;  %1158 = vst.msk [vmem:[#allocation5 + $0x28] sm:$0xff] %vm478_vm2, %v1991_v35  ;;  %825 = vperm.xlu0 %1557, %v1991_v35  }
 0x2e4   : > { %v780_v41 = vpop.xlane.xlu0 %779 }
 0x2e5   : > { %v2001_v29 = vmax.f32 %v1993_v38, %v780_v41  ;;  %v888_v25 = vmul.f32 1.442695, %v875_v39 }
 0x2e7   : > { %v874_v43 = vsub.f32 %v1993_v38, %v2001_v29  ;;  %1157 = vst.msk [vmem:[#allocation5 + $0x20] sm:$0xff] %vm478_vm2, %v2001_v29  ;;  %820 = vperm.xlu0 %1557, %v2001_v29   ;;  %v894_v38 = vld [vmem:[#allocation6] sm:$0xff] }
 0x2e8   : > { %v786_v44 = vpop.xlane.xlu0 %785 }
 0x2e9   : > { %v2011_v45 = vmax.f32 %v2003_v42, %v786_v44  ;;  %v886_v21 = vmul.f32 1.442695, %v874_v43  ;;  %v895_v43 = vld [vmem:[#allocation6 + $0x8] sm:$0xff] }
 0x2eb   : > { %v876_v49 = vsub.f32 %v2003_v42, %v2011_v45  ;;  %1159 = vst.msk [vmem:[#allocation5 + $0x30] sm:$0xff] %vm478_vm2, %v2011_v45  ;;  %830 = vperm.xlu0 %1557, %v2011_v45  }
 0x2ec   : > { %v789_v37 = vpop.xlane.xlu0 %788 }
 0x2ed   : > { %v2021_v50 = vmax.f32 %v2013_v47, %v789_v37  ;;  %v890_v20 = vmul.f32 1.442695, %v876_v49  ;;  %v897_v49 = vld [vmem:[#allocation6 + $0x18] sm:$0xff] }
 0x2ef   : > { %v877_v51 = vsub.f32 %v2013_v47, %v2021_v50  ;;  %1160 = vst.msk [vmem:[#allocation5 + $0x38] sm:$0xff] %vm478_vm2, %v2021_v50  ;;  %835 = vperm.xlu0 %1557, %v2021_v50  }
 0x2f1   : > { %v892_v11 = vmul.f32 1.442695, %v877_v51 }
 0x352   : > { %v801_v52 = vpop.permute.xlu0 %800 }
 0x353   : > { %v838_v54 = vsub.f32 %v1856_v23, %v801_v52 }
 0x355   : > { %v846_v56 = vmul.f32 1.442695, %v838_v54 }
 0x356   : > { %v816_v58 = vpop.permute.xlu1 %815 }
 0x357   : > { %1559 = vpow2.f32 %v846_v56  ;;  %v841_v59 = vsub.f32 %v1871_v36, %v816_v58 }
 0x359   : > { %v852_v31 = vmul.f32 1.442695, %v841_v59 }
 0x35a   : > { %v806_v53 = vpop.permute.xlu1 %805  ;;  %v811_v60 = vpop.permute.xlu0 %810 }
 0x35b   : > { %v839_v63 = vsub.f32 %v1849_v18, %v806_v53  ;;  %v840_v1 = vsub.f32 %v1884_v46, %v811_v60  ;;  %1561 = vpow2.f32 %v852_v31 }
 0x35d   : > { %v848_v2 = vmul.f32 1.442695, %v839_v63  ;;  %v850_v3 = vmul.f32 1.442695, %v840_v1 }
 0x35e   : > { %v826_v4 = vpop.permute.xlu0 %825 }
 0x35f   : > { %1563 = vpow2.f32 %v848_v2  ;;  %v843_v6 = vsub.f32 %v1897_v55, %v826_v4 }
 0x360   : > { %1565 = vpow2.f32 %v850_v3 }
 0x361   : > { %v856_v23 = vmul.f32 1.442695, %v843_v6  ;;  %v898_v6 = vld [vmem:[#allocation6 + $0x20] sm:$0xff] }
 0x362   : > { %v821_v9 = vpop.permute.xlu0 %820 }
 0x363   : > { %v842_v10 = vsub.f32 %v1908_v61, %v821_v9  ;;  %1567 = vpow2.f32 %v856_v23  ;;  %v896_v23 = vld [vmem:[#allocation6 + $0x10] sm:$0xff] }
 0x364   : > { %v1560_v36 = vpop.eup %1559 }
 0x365   : > { %v854_v12 = vmul.f32 1.442695, %v842_v10  ;;  %v862_v17 = vsel %vm1841_vm0, %v1560_v36, 0.0 }
 0x366   : > { %1502 = vmatprep.mubr.msk.f32.mxu0 %vm765_vm12, %v862_v17  ;;  %v831_v18 = vpop.permute.xlu0 %830  ;;  %v910_v46 = vsel %vm765_vm12, %v862_v17, 0.0 }
 0x367   : > { %1569 = vpow2.f32 %v854_v12  ;;  %v844_v22 = vsub.f32 %v1918_v62, %v831_v18  ;;  %911 = vadd.xlane.f32.xlu1 %v910_v46  ;;  %v900_v18 = vld [vmem:[#allocation6 + $0x30] sm:$0xff]  ;;  %v899_v46 = vld [vmem:[#allocation6 + $0x28] sm:$0xff] }
 0x368   : > { %v1562_v34 = vpop.eup %1561 }
 0x369   : > { %v858_v55 = vmul.f32 1.442695, %v844_v22 }
 0x36a   : > { %v836_v28 = vpop.permute.xlu0 %835 }
 0x36b   : > { %1571 = vpow2.f32 %v858_v55  ;;  %v845_v61 = vsub.f32 %v1928_v8, %v836_v28  ;;  %v865_v8 = vsel %vm1861_vm4, %v1562_v34, 0.0 }
 0x36c   : > { %v1564_v41 = vpop.eup %1563  ;;  %v919_v54 = vsel %vm765_vm12, %v865_v8, 0.0 }
 0x36d   : > { %v1566_v44 = vpop.eup %1565  ;;  %v860_v14 = vmul.f32 1.442695, %v845_v61  ;;  %v863_v37 = vsel %vm1830_vm14, %v1564_v41, 0.0 }
 0x36e   : > { %1503 = vmatmul.mubr.msk.f32.vlgmr.msra.gmra.mxu0 %vm765_vm12, %v863_v37  ;;  %v864_v52 = vsel %vm1873_vm7, %v1566_v44, 0.0  ;;  %v913_v62 = vsel %vm765_vm12, %v863_v37, 0.0  ;;  %v901_v37 = vld [vmem:[#allocation6 + $0x38] sm:$0xff] }
 0x36f   : > { %1573 = vpow2.f32 %v860_v14  ;;  %1505 = vmatprep.mubr.msk.f32.mxu1 %vm765_vm12, %v864_v52  ;;  %914 = vadd.xlane.f32.xlu0 %v913_v62  ;;  %v916_v58 = vsel %vm765_vm12, %v864_v52, 0.0 }
 0x370   : > { %1506 = vmatmul.mubr.msk.f32.vlgmr.msra.gmra.mxu1 %vm765_vm12, %v865_v8  ;;  %v1568_v7 = vpop.eup %1567  ;;  %1575 = vpow2.f32 %v878_v57 }
 0x371   : > { %v867_v27 = vsel %vm1886_vm10, %v1568_v7, 0.0  ;;  %1577 = vpow2.f32 %v882_v0 }
 0x372   : > { %v925_v60 = vsel %vm765_vm12, %v867_v27, 0.0  ;;  %1579 = vpow2.f32 %v884_v19 }
 0x373   : > { %920 = vadd.xlane.f32.xlu0 %v919_v54  ;;  %1581 = vpow2.f32 %v880_v5 }
 0x374   : > { %v1570_v56 = vpop.eup %1569  ;;  %1583 = vpow2.f32 %v886_v21 }
 0x375   : > { %v866_v40 = vsel %vm1899_vm15, %v1570_v56, 0.0  ;;  %1585 = vpow2.f32 %v888_v25 }
 0x376   : > { %1508 = vmatprep.mubr.msk.f32.mxu1 %vm765_vm12, %v866_v40  ;;  %v922_v59 = vsel %vm765_vm12, %v866_v40, 0.0  ;;  %1587 = vpow2.f32 %v890_v20 }
 0x377   : > { %917 = vadd.xlane.f32.xlu0 %v916_v58  ;;  %923 = vadd.xlane.f32.xlu1 %v922_v59  ;;  %1589 = vpow2.f32 %v892_v11 }
 0x378   : > { %v1572_v31 = vpop.eup %1571  ;;  %1509 = vmatmul.mubr.msk.f32.gmra.mxu1 %vm765_vm12, %v867_v27 }
 0x379   : > { %v868_v53 = vsel %vm1910_vm5, %v1572_v31, 0.0 }
 0x37a   : > { %1511 = vmatprep.mubr.msk.f32.mxu1 %vm765_vm12, %v868_v53  ;;  %v928_v63 = vsel %vm765_vm12, %v868_v53, 0.0 }
 0x37b   : > { %926 = vadd.xlane.f32.xlu0 %v925_v60  ;;  %929 = vadd.xlane.f32.xlu1 %v928_v63 }
 0x37c   : > { %v1574_v48 = vpop.eup %1573 }
 0x37d   : > { %v869_v1 = vsel %vm1920_vm6, %v1574_v48, 0.0  ;;  %v1576_v24 = vpop.eup %1575 }
 0x37e   : > { %1512 = vmatmul.mubr.msk.f32.gmra.mxu1 %vm765_vm12, %v869_v1  ;;  %v931_v15 = vsel %vm765_vm12, %v869_v1, 0.0  ;;  %v1578_v13 = vpop.eup %1577  ;;  %v902_v39 = vmul.f32 %v1576_v24, %v894_v38  ;;  %v953_v38 = vld [vmem:[#allocation7 + $0x10] sm:$0xff] }
 0x37f   : > { %932 = vadd.xlane.f32.xlu0 %v931_v15  ;;  %v1580_v16 = vpop.eup %1579  ;;  %v904_v36 = vmul.f32 %v1578_v13, %v896_v23  ;;  %v955_v23 = vld [vmem:[#allocation7 + $0x20] sm:$0xff] }
 0x380   : > { %v1582_v26 = vpop.eup %1581  ;;  %v905_v2 = vmul.f32 %v1580_v16, %v897_v49 }
 0x381   : > { %v1584_v30 = vpop.eup %1583  ;;  %v903_v45 = vmul.f32 %v1582_v26, %v895_v43 }
 0x382   : > { %v1586_v32 = vpop.eup %1585  ;;  %v906_v10 = vmul.f32 %v1584_v30, %v898_v6 }
 0x383   : > { %v1588_v33 = vpop.eup %1587  ;;  %v907_v61 = vmul.f32 %v1586_v32, %v899_v46 }
 0x384   : > { %v1590_v35 = vpop.eup %1589  ;;  %v908_v34 = vmul.f32 %v1588_v33, %v900_v18  ;;  %v958_v18 = vld [vmem:[#allocation7 + $0x38] sm:$0xff] }
 0x385   : > { %v909_v54 = vmul.f32 %v1590_v35, %v901_v37 }
 0x38c   : > { %961 = vperm.xlu1 %1558, %v1576_v24  }
 0x390   : > { %971 = vperm.xlu1 %1558, %v1578_v13  }
 0x394   : > { %976 = vperm.xlu1 %1558, %v1580_v16   ;;  %v952_v16 = vld [vmem:[#allocation7 + $0x8] sm:$0xff] }
 0x395   : > { %966 = vperm.xlu0 %1557, %v1582_v26  }
 0x398   : > { %981 = vperm.xlu1 %1558, %v1584_v30   ;;  %v951_v30 = vld [vmem:[#allocation7] sm:$0xff] }
 0x399   : > { %986 = vperm.xlu0 %1557, %v1586_v32   ;;  %v954_v32 = vld [vmem:[#allocation7 + $0x18] sm:$0xff] }
 0x39c   : > { %991 = vperm.xlu1 %1558, %v1588_v33  }
 0x39d   : > { %996 = vperm.xlu0 %1557, %v1590_v35  }
 0x3f0   : > { %v912_v29 = vpop.xlane.xlu1 %911 }
 0x3f1   : > { %v934_v42 = vadd.f32 %v912_v29, %v902_v39 }
 0x3f3   : > { %943 = vst.msk [vmem:[#allocation6] sm:$0xff] %vm478_vm2, %v934_v42 }
 0x3f8   : > { %v915_v47 = vpop.xlane.xlu0 %914 }
 0x3f9   : > { %v935_v50 = vadd.f32 %v915_v47, %v903_v45 }
 0x3fa   : > { %v1164_v51 = vld [vmem:[#allocation6] sm:$0xff] }
 0x3fb   : > { %944 = vst.msk [vmem:[#allocation6 + $0x8] sm:$0xff] %vm478_vm2, %v935_v50  ;;  %v1172_v3 = vmax.f32 %v1164_v51, 1e-30 }
 0x3fc   : > { %v921_v4 = vpop.xlane.xlu0 %920 }
 0x3fd   : > { %v937_v9 = vadd.f32 %v921_v4, %v905_v2  ;;  %1591 = vrcp.f32 %v1172_v3  ;;  %v956_v4 = vld [vmem:[#allocation7 + $0x28] sm:$0xff] }
 0x3ff   : > { %946 = vst.msk [vmem:[#allocation6 + $0x18] sm:$0xff] %vm478_vm2, %v937_v9 }
 0x400   : > { %v924_v12 = vpop.xlane.xlu1 %923  ;;  %v918_v17 = vpop.xlane.xlu0 %917 }
 0x401   : > { %v938_v22 = vadd.f32 %v924_v12, %v906_v10  ;;  %v936_v55 = vadd.f32 %v918_v17, %v904_v36 }
 0x402   : > { %v1165_v28 = vld [vmem:[#allocation6 + $0x8] sm:$0xff] }
 0x403   : > { %947 = vst.msk [vmem:[#allocation6 + $0x20] sm:$0xff] %vm478_vm2, %v938_v22  ;;  %945 = vst.msk [vmem:[#allocation6 + $0x10] sm:$0xff] %vm478_vm2, %v936_v55  ;;  %v1173_v41 = vmax.f32 %v1165_v28, 1e-30  ;;  %v957_v28 = vld [vmem:[#allocation7 + $0x30] sm:$0xff] }
 0x404   : > { %v930_v44 = vpop.xlane.xlu1 %929  ;;  %v927_v14 = vpop.xlane.xlu0 %926 }
 0x405   : > { %v940_v52 = vadd.f32 %v930_v44, %v908_v34  ;;  %v939_v62 = vadd.f32 %v927_v14, %v907_v61  ;;  %1593 = vrcp.f32 %v1173_v41 }
 0x406   : > { %v1167_v8 = vld [vmem:[#allocation6 + $0x18] sm:$0xff] }
 0x407   : > { %949 = vst.msk [vmem:[#allocation6 + $0x30] sm:$0xff] %vm478_vm2, %v940_v52  ;;  %948 = vst.msk [vmem:[#allocation6 + $0x28] sm:$0xff] %vm478_vm2, %v939_v62  ;;  %v1175_v7 = vmax.f32 %v1167_v8, 1e-30 }
 0x408   : > { %v933_v56 = vpop.xlane.xlu0 %932  ;;  %v962_v20 = vpop.permute.xlu1 %961 }
 0x409   : > { %v941_v40 = vadd.f32 %v933_v56, %v909_v54  ;;  %1595 = vrcp.f32 %v1175_v7  ;;  %v999_v29 = vmul.f32 %v962_v20, %v951_v30 }
 0x40a   : > { %v1592_v58 = vpop.eup %1591  ;;  %v1166_v59 = vld [vmem:[#allocation6 + $0x10] sm:$0xff]  ;;  %v1168_v27 = vld [vmem:[#allocation6 + $0x20] sm:$0xff] }
 0x40b   : > { %950 = vst.msk [vmem:[#allocation6 + $0x38] sm:$0xff] %vm478_vm2, %v941_v40  ;;  %1198 = vperm.xlu1 %1558, %v1592_v58   ;;  %v1174_v31 = vmax.f32 %v1166_v59, 1e-30  ;;  %v1176_v53 = vmax.f32 %v1168_v27, 1e-30 }
 0x40c   : > { %v972_v13 = vpop.permute.xlu1 %971 }
 0x40d   : > { %1597 = vrcp.f32 %v1174_v31  ;;  %v1001_v49 = vmul.f32 %v972_v13, %v953_v38 }
 0x40e   : > { %v1169_v57 = vld [vmem:[#allocation6 + $0x28] sm:$0xff]  ;;  %v1170_v60 = vld [vmem:[#allocation6 + $0x30] sm:$0xff]  ;;  %1599 = vrcp.f32 %v1176_v53 }
 0x40f   : > { %v1177_v63 = vmax.f32 %v1169_v57, 1e-30  ;;  %v1178_v48 = vmax.f32 %v1170_v60, 1e-30 }
 0x410   : > { %v967_v26 = vpop.permute.xlu0 %966  ;;  %v977_v33 = vpop.permute.xlu1 %976 }
 0x411   : > { %1601 = vrcp.f32 %v1177_v63  ;;  %v1000_v35 = vmul.f32 %v967_v26, %v952_v16  ;;  %v1002_v42 = vmul.f32 %v977_v33, %v954_v32 }
 0x412   : > { %v1594_v1 = vpop.eup %1593  ;;  %v1171_v0 = vld [vmem:[#allocation6 + $0x38] sm:$0xff]  ;;  %1603 = vrcp.f32 %v1178_v48 }
 0x413   : > { %1203 = vperm.xlu0 %1557, %v1594_v1   ;;  %v1179_v15 = vmax.f32 %v1171_v0, 1e-30 }
 0x414   : > { %v987_v6 = vpop.permute.xlu0 %986  ;;  %v982_v9 = vpop.permute.xlu1 %981 }
 0x415   : > { %1605 = vrcp.f32 %v1179_v15  ;;  %v1004_v10 = vmul.f32 %v987_v6, %v956_v4  ;;  %v1003_v12 = vmul.f32 %v982_v9, %v955_v23 }
 0x416   : > { %v1596_v19 = vpop.eup %1595 }
 0x417   : > { %1213 = vperm.xlu0 %1557, %v1596_v19  }
 0x418   : > { %v997_v46 = vpop.permute.xlu0 %996  ;;  %v992_v34 = vpop.permute.xlu1 %991 }
 0x419   : > { %v1006_v61 = vmul.f32 %v997_v46, %v958_v18  ;;  %v1005_v44 = vmul.f32 %v992_v34, %v957_v28 }
 0x41a   : > { %v1598_v5 = vpop.eup %1597 }
 0x41b   : > { %1208 = vperm.xlu1 %1558, %v1598_v5   ;;  %v1600_v21 = vpop.eup %1599 }
 0x41e   : > { %v1602_v25 = vpop.eup %1601 }
 0x41f   : > { %1218 = vperm.xlu1 %1558, %v1600_v21   ;;  %1223 = vperm.xlu0 %1557, %v1602_v25   ;;  %v1604_v24 = vpop.eup %1603 }
 0x422   : > { %v1606_v11 = vpop.eup %1605 }
 0x423   : > { %1228 = vperm.xlu1 %1558, %v1604_v24   ;;  %1233 = vperm.xlu0 %1557, %v1606_v11  }
 0x42e   : > { %v1504_v39 = vpop.f32.mrf.mxu0 }
 0x42f   : > { %v1137_v43 = vadd.f32 %v1504_v39, %v1000_v35 }
 0x430   : > { %v1507_v45 = vpop.f32.mrf.mxu1  ;;  %v1097_v47 = vpop.f32.mrf.mxu0 }
 0x431   : > { %1146 = vst.msk [vmem:[#allocation7 + $0x8] sm:$0xff] %vm430_vm1, %v1137_v43  ;;  %v1139_v50 = vadd.f32 %v1507_v45, %v1002_v42  ;;  %v1136_v51 = vadd.f32 %v1097_v47, %v999_v29 }
 0x432   : > { %v1107_v2 = vpop.f32.mrf.mxu1 }
 0x433   : > { %1148 = vst.msk [vmem:[#allocation7 + $0x18] sm:$0xff] %vm430_vm1, %v1139_v50  ;;  %1145 = vst.msk [vmem:[#allocation7] sm:$0xff] %vm430_vm1, %v1136_v51  ;;  %v1138_v3 = vadd.f32 %v1107_v2, %v1001_v49 }
 0x435   : > { %1147 = vst.msk [vmem:[#allocation7 + $0x10] sm:$0xff] %vm430_vm1, %v1138_v3 }
 0x438   : > { %v1510_v36 = vpop.f32.mrf.mxu1  ;;  %v1189_v58 = vld [vmem:[#allocation7 + $0x8] sm:$0xff] }
 0x439   : > { %v1141_v17 = vadd.f32 %v1510_v36, %v1004_v10 }
 0x43a   : > { %v1117_v22 = vpop.f32.mrf.mxu1  ;;  %v1188_v8 = vld [vmem:[#allocation7] sm:$0xff]  ;;  %v1191_v53 = vld [vmem:[#allocation7 + $0x18] sm:$0xff] }
 0x43b   : > { %1150 = vst.msk [vmem:[#allocation7 + $0x28] sm:$0xff] %vm430_vm1, %v1141_v17  ;;  %v1140_v55 = vadd.f32 %v1117_v22, %v1003_v12 }
 0x43c   : > { %v1190_v1 = vld [vmem:[#allocation7 + $0x10] sm:$0xff] }
 0x43d   : > { %1149 = vst.msk [vmem:[#allocation7 + $0x20] sm:$0xff] %vm430_vm1, %v1140_v55 }
 0x43e   : > { %v1513_v41 = vpop.f32.mrf.mxu1 }
 0x43f   : > { %v1143_v14 = vadd.f32 %v1513_v41, %v1006_v61 }
 0x440   : > { %v1127_v37 = vpop.f32.mrf.mxu1 }
 0x441   : > { %1152 = vst.msk [vmem:[#allocation7 + $0x38] sm:$0xff] %vm430_vm1, %v1143_v14  ;;  %v1142_v52 = vadd.f32 %v1127_v37, %v1005_v44 }
 0x442   : > { %v1193_v24 = vld [vmem:[#allocation7 + $0x28] sm:$0xff] }
 0x443   : > { %1151 = vst.msk [vmem:[#allocation7 + $0x30] sm:$0xff] %vm430_vm1, %v1142_v52 }
 0x444   : > { %v1192_v25 = vld [vmem:[#allocation7 + $0x20] sm:$0xff] }
 0x448   : > { %v1195_v29 = vld [vmem:[#allocation7 + $0x38] sm:$0xff] }
 0x44a   : > { %v1194_v38 = vld [vmem:[#allocation7 + $0x30] sm:$0xff] }
 0x486   : > { %v1199_v62 = vpop.permute.xlu1 %1198 }
 0x487   : > { %v1236_v54 = vmul.f32 %v1199_v62, %v1188_v8 }
 0x489   : > { %v1252_v7 = vmin.f32 %v1236_v54, 0.0  ;;  %vm1244_vm2 = vcmp.gt.f32.partialorder %v1236_v54, 0.0 }
 0x48b   : > { %v1260_v56 = vmul.f32 1.442695, %v1252_v7 }
 0x48d   : > { %1607 = vpow2.f32 %v1260_v56 }
 0x48e   : > { %v1204_v40 = vpop.permute.xlu0 %1203 }
 0x48f   : > { %v1237_v59 = vmul.f32 %v1204_v40, %v1189_v58 }
 0x491   : > { %v1253_v27 = vmin.f32 %v1237_v59, 0.0  ;;  %vm1245_vm12 = vcmp.gt.f32.partialorder %v1237_v59, 0.0 }
 0x492   : > { %v1214_v31 = vpop.permute.xlu0 %1213 }
 0x493   : > { %v1262_v57 = vmul.f32 1.442695, %v1253_v27  ;;  %v1239_v60 = vmul.f32 %v1214_v31, %v1191_v53 }
 0x495   : > { %1609 = vpow2.f32 %v1262_v57  ;;  %v1255_v63 = vmin.f32 %v1239_v60, 0.0  ;;  %vm1247_vm14 = vcmp.gt.f32.partialorder %v1239_v60, 0.0 }
 0x496   : > { %v1209_v48 = vpop.permute.xlu1 %1208 }
 0x497   : > { %v1266_v0 = vmul.f32 1.442695, %v1255_v63  ;;  %v1238_v15 = vmul.f32 %v1209_v48, %v1190_v1 }
 0x499   : > { %1611 = vpow2.f32 %v1266_v0  ;;  %v1254_v19 = vmin.f32 %v1238_v15, 0.0  ;;  %vm1246_vm0 = vcmp.gt.f32.partialorder %v1238_v15, 0.0 }
 0x49a   : > { %v1608_v5 = vpop.eup %1607  ;;  %v1219_v21 = vpop.permute.xlu1 %1218 }
 0x49b   : > { %v1224_v20 = vpop.permute.xlu0 %1223  ;;  %v1426_v11 = vadd.f32 -1.0, %v1608_v5  ;;  %v1264_v13 = vmul.f32 1.442695, %v1254_v19  ;;  %v1240_v16 = vmul.f32 %v1219_v21, %v1192_v25 }
 0x49c   : > { %v1241_v26 = vmul.f32 %v1224_v20, %v1193_v24 }
 0x49d   : > { %v1284_v30 = vsel %vm1244_vm2, %v1236_v54, %v1426_v11  ;;  %1613 = vpow2.f32 %v1264_v13  ;;  %v1256_v32 = vmin.f32 %v1240_v16, 0.0  ;;  %vm1248_vm4 = vcmp.gt.f32.partialorder %v1240_v16, 0.0 }
 0x49e   : > { %1292 = vst.msk [vmem:[%s2112_s9] sm:$0xff] %vm430_vm1, %v1284_v30  ;;  %v1257_v33 = vmin.f32 %v1241_v26, 0.0  ;;  %v1229_v35 = vpop.permute.xlu1 %1228  ;;  %vm1249_vm7 = vcmp.gt.f32.partialorder %v1241_v26, 0.0 }
 0x49f   : > { %v1234_v39 = vpop.permute.xlu0 %1233  ;;  %v1268_v42 = vmul.f32 1.442695, %v1256_v32  ;;  %v1242_v43 = vmul.f32 %v1229_v35, %v1194_v38 }
 0x4a0   : > { %v1243_v45 = vmul.f32 %v1234_v39, %v1195_v29  ;;  %v1270_v47 = vmul.f32 1.442695, %v1257_v33 }
 0x4a1   : > { %1615 = vpow2.f32 %v1268_v42  ;;  %v1258_v49 = vmin.f32 %v1242_v43, 0.0  ;;  %vm1250_vm8 = vcmp.gt.f32.partialorder %v1242_v43, 0.0 }
 0x4a2   : > { %v1610_v50 = vpop.eup %1609  ;;  %1617 = vpow2.f32 %v1270_v47  ;;  %v1259_v51 = vmin.f32 %v1243_v45, 0.0  ;;  %vm1251_vm9 = vcmp.gt.f32.partialorder %v1243_v45, 0.0 }
 0x4a3   : > { %v1427_v2 = vadd.f32 -1.0, %v1610_v50  ;;  %v1272_v3 = vmul.f32 1.442695, %v1258_v49 }
 0x4a4   : > { %v1274_v4 = vmul.f32 1.442695, %v1259_v51 }
 0x4a5   : > { %v1285_v6 = vsel %vm1245_vm12, %v1237_v59, %v1427_v2  ;;  %1619 = vpow2.f32 %v1272_v3 }
 0x4a6   : > { %v1612_v23 = vpop.eup %1611  ;;  %1293 = vst.msk [vmem:[%s2112_s9 + $0x8] sm:$0xff] %vm430_vm1, %v1285_v6  ;;  %1621 = vpow2.f32 %v1274_v4 }
 0x4a7   : > { %v1429_v9 = vadd.f32 -1.0, %v1612_v23 }
 0x4a9   : > { %v1287_v10 = vsel %vm1247_vm14, %v1239_v60, %v1429_v9 }
 0x4aa   : > { %v1614_v36 = vpop.eup %1613  ;;  %1295 = vst.msk [vmem:[%s2112_s9 + $0x18] sm:$0xff] %vm430_vm1, %v1287_v10 }
 0x4ab   : > { %v1428_v12 = vadd.f32 -1.0, %v1614_v36 }
 0x4ad   : > { %v1286_v17 = vsel %vm1246_vm0, %v1238_v15, %v1428_v12 }
 0x4ae   : > { %v1616_v18 = vpop.eup %1615  ;;  %1294 = vst.msk [vmem:[%s2112_s9 + $0x10] sm:$0xff] %vm430_vm1, %v1286_v17 }
 0x4af   : > { %v1618_v46 = vpop.eup %1617  ;;  %v1430_v22 = vadd.f32 -1.0, %v1616_v18 }
 0x4b0   : > { %v1431_v55 = vadd.f32 -1.0, %v1618_v46 }
 0x4b1   : > { %v1288_v28 = vsel %vm1248_vm4, %v1240_v16, %v1430_v22 }
 0x4b2   : > { %v1620_v34 = vpop.eup %1619  ;;  %1296 = vst.msk [vmem:[%s2112_s9 + $0x20] sm:$0xff] %vm430_vm1, %v1288_v28  ;;  %v1289_v61 = vsel %vm1249_vm7, %v1241_v26, %v1431_v55 }
 0x4b3   : > { %v1622_v41 = vpop.eup %1621  ;;  %1297 = vst.msk [vmem:[%s2112_s9 + $0x28] sm:$0xff] %vm430_vm1, %v1289_v61  ;;  %v1432_v44 = vadd.f32 -1.0, %v1620_v34 }
 0x4b4   : > { %v1433_v14 = vadd.f32 -1.0, %v1622_v41 }
 0x4b5   : > { %v1290_v37 = vsel %vm1250_vm8, %v1242_v43, %v1432_v44 }
 0x4b6   : > { %1298 = vst.msk [vmem:[%s2112_s9 + $0x30] sm:$0xff] %vm430_vm1, %v1290_v37  ;;  %v1291_v52 = vsel %vm1251_vm9, %v1243_v45, %v1433_v14 }
 0x4b7   : > { %1299 = vst.msk [vmem:[%s2112_s9 + $0x38] sm:$0xff] %vm430_vm1, %v1291_v52 }
 0x4b8 PF: > { %s15_s20 = sadd.s32 1, %s1645_s20   ;;  %s2165_s18 = smov %s1641_s19 }
 0x4b9   : > { %p12_p5 = scmp.ge.s32.totalorder %s15_s20, 6   ;;  %s2166_s19 = smov %s2168_s21 }
 0x4bb   :  { %14 = sbr.rel (!%p12_p5) target bundleno = 2 (0x2), region = 87 }

</bundles_post_ra>
